<compile_context>
chip_gen: v7x
topology: tpu7x:2x2x1
jax: 0.10.0
libtpu: 0.0.40
codegen_flags: <defaults>
</compile_context>

<pallas_src>
import functools

import jax
import jax.numpy as jnp
from jax import lax
from jax.experimental import pallas as pl
from jax.experimental.pallas import tpu as pltpu

LEAKY_SLOPE = 0.2
GN_EPS = 1e-5
GN_GROUPS = 2


def stride_generator(N, reverse=False):
    strides = [1, 2] * 10
    return list(reversed(strides[:N])) if reverse else strides[:N]


# ----------------------------------------------------------------------------
# Pallas kernel: fused 3x3 conv (3 banded matmuls) + GroupNorm(2) + LeakyReLU.
# One grid step == one batch sample; everything is lane-dense (last dim W*C).
# ----------------------------------------------------------------------------
def _convsc_kernel(xg_ref, wb_ref, pb_ref, out_ref, *, stride, h_out, inv_cnt):
    # xg_ref : (1, stride, Hq, Wp*C_in)   bf16  padded input rows, H-phase split
    # wb_ref : (3, Wp*C_in, W_out*C_out)  bf16  banded conv weight (one per kh)
    # pb_ref : (5, W_out*C_out)           f32   [bias, gamma, beta, mask_g0, mask_g1]
    # out_ref: (1, H_out, W_out*C_out)    f32
    y = None
    for kh in range(3):
        a, dh = kh % stride, kh // stride          # phase / row offset for this tap
        x_kh = xg_ref[0, a, pl.ds(dh, h_out), :]   # (H_out, Wp*C_in) bf16
        part = jnp.dot(x_kh, wb_ref[kh], preferred_element_type=jnp.float32)
        y = part if y is None else y + part        # f32 accumulation

    bias = pb_ref[0:1, :]
    gamma = pb_ref[1:2, :]
    beta = pb_ref[2:3, :]
    m0 = pb_ref[3:4, :]                            # group-0 channel mask (tiled over W)
    m1 = pb_ref[4:5, :]                            # group-1 channel mask

    u = y + bias                                   # conv output, (H_out, W_out*C_out) f32

    # single pass over u: per-column sums / sums of squares, then group-combine
    row_s = jnp.sum(u, axis=0, keepdims=True)      # (1, W*C)
    row_q = jnp.sum(u * u, axis=0, keepdims=True)  # (1, W*C)
    s0 = jnp.sum(row_s * m0, axis=1, keepdims=True)   # (1, 1)
    s1 = jnp.sum(row_s * m1, axis=1, keepdims=True)
    q0 = jnp.sum(row_q * m0, axis=1, keepdims=True)
    q1 = jnp.sum(row_q * m1, axis=1, keepdims=True)

    mean0 = s0 * inv_cnt
    mean1 = s1 * inv_cnt
    var0 = q0 * inv_cnt - mean0 * mean0            # biased variance (torch GroupNorm)
    var1 = q1 * inv_cnt - mean1 * mean1
    inv0 = lax.rsqrt(var0 + GN_EPS)
    inv1 = lax.rsqrt(var1 + GN_EPS)

    mean_c = mean0 * m0 + mean1 * m1               # (1, W*C) per-element stats
    scale_c = (inv0 * m0 + inv1 * m1) * gamma
    shift_c = beta - mean_c * scale_c

    z = u * scale_c + shift_c                      # GN + affine, lane-dense
    out_ref[0] = jnp.where(z > 0, z, LEAKY_SLOPE * z)


# ----------------------------------------------------------------------------
# Host-side glue (pure cheap reshuffles: pad, phase-split rows, band weights)
# ----------------------------------------------------------------------------
def _prep_input(x, stride):
    # x: (N, H, W, C) f32 -> (N, stride, Hq, Wp*C) bf16, rows phase-split by stride.
    N, H, W, C = x.shape
    Hp, Wp = H + 2, W + 2
    xf = jnp.pad(x, ((0, 0), (1, 1), (1, 1), (0, 0))).reshape(N, Hp, Wp * C)
    if stride > 1:
        Hq = -(-Hp // stride)
        xf = jnp.pad(xf, ((0, 0), (0, Hq * stride - Hp), (0, 0)))
        xg = jnp.stack([xf[:, a::stride, :] for a in range(stride)], axis=1)
    else:
        xg = xf[:, None]
    return xg.astype(jnp.bfloat16)


def _band_weights(w, Wp, W_out, stride):
    # w: (3, 3, C_in, C_out) -> (3, Wp*C_in, W_out*C_out) banded matrices, bf16.
    # B_kh[q*C_in+ci, j*C_out+co] = w[kh, q - stride*j, ci, co] if 0<=q-stride*j<=2 else 0
    C_in, C_out = w.shape[2], w.shape[3]
    q = jnp.arange(Wp)[:, None]
    j = jnp.arange(W_out)[None, :]
    kw = q - stride * j                                      # (Wp, W_out)
    sel = ((kw >= 0) & (kw <= 2)).astype(w.dtype)
    kw_c = jnp.clip(kw, 0, 2)
    wb = w[:, kw_c, :, :]                                    # (3, Wp, W_out, C_in, C_out)
    wb = wb * sel[None, :, :, None, None]
    wb = jnp.transpose(wb, (0, 1, 3, 2, 4))                  # (3, Wp, C_in, W_out, C_out)
    return wb.reshape(3, Wp * C_in, W_out * C_out).astype(jnp.bfloat16)


def _pack_affine(params, W_out, C_out):
    # Pack bias/gamma/beta + group masks into one (5, W_out*C_out) f32 operand.
    b, gamma, beta = params["b"], params["gamma"], params["beta"]   # each (1, C_out)
    ch = C_out // GN_GROUPS
    m1 = (jnp.arange(C_out) >= ch).astype(jnp.float32)[None, :]
    m0 = 1.0 - m1
    pb = jnp.concatenate([b, gamma, beta, m0, m1], axis=0)          # (5, C_out)
    return jnp.tile(pb, (1, W_out))                                 # (5, W_out*C_out)


def conv_sc(x, params, stride):
    # x: (N, H, W, C_in) f32 ; returns (N, H_out, W_out, C_out) f32.
    N, H, W, C_in = x.shape
    C_out = params["w"].shape[-1]
    assert C_out % GN_GROUPS == 0
    H_out = (H - 1) // stride + 1
    W_out = (W - 1) // stride + 1
    Wp = W + 2
    WC = W_out * C_out
    K = Wp * C_in

    xg = _prep_input(x, stride)                       # (N, stride, Hq, K) bf16
    wb = _band_weights(params["w"], Wp, W_out, stride)
    pb = _pack_affine(params, W_out, C_out)
    n_phase, Hq = xg.shape[1], xg.shape[2]
    inv_cnt = 1.0 / float(H_out * W_out * (C_out // GN_GROUPS))

    kernel = functools.partial(_convsc_kernel, stride=stride, h_out=H_out,
                               inv_cnt=inv_cnt)

    out = pl.pallas_call(
        kernel,
        out_shape=jax.ShapeDtypeStruct((N, H_out, WC), jnp.float32),
        grid_spec=pltpu.PrefetchScalarGridSpec(
            num_scalar_prefetch=0,
            grid=(N,),
            in_specs=[
                pl.BlockSpec((1, n_phase, Hq, K), lambda n: (n, 0, 0, 0)),
                pl.BlockSpec((3, K, WC), lambda n: (0, 0, 0)),
                pl.BlockSpec((5, WC), lambda n: (0, 0)),
            ],
            out_specs=pl.BlockSpec((1, H_out, WC), lambda n: (n, 0, 0)),
        ),
        compiler_params=pltpu.CompilerParams(
            dimension_semantics=("parallel",),        # batch -> both TCs on v7x
            vmem_limit_bytes=32 * 1024 * 1024,
        ),
    )(xg, wb, pb)
    return out.reshape(N, H_out, W_out, C_out)        # free: already NHWC-flat


# ----------------------------------------------------------------------------
# Encoder params + forward (matches Encoder.forward -> (latent, enc1))
# ----------------------------------------------------------------------------
def init_encoder_params(key, C_in, C_hid, N_S):
    strides = stride_generator(N_S)
    params = []
    cin = C_in
    for _ in strides:
        key, k1, k2, k3, k4 = jax.random.split(key, 5)
        fan_in = 9 * cin
        w = jax.random.normal(k1, (3, 3, cin, C_hid), jnp.float32) / jnp.sqrt(fan_in)
        b = 0.05 * jax.random.normal(k2, (1, C_hid), jnp.float32)
        gamma = 1.0 + 0.1 * jax.random.normal(k3, (1, C_hid), jnp.float32)
        beta = 0.05 * jax.random.normal(k4, (1, C_hid), jnp.float32)
        params.append({"w": w, "b": b, "gamma": gamma, "beta": beta})
        cin = C_hid
    return params, strides


def encoder_forward(x_nchw, params, strides):
    # x_nchw: (N, C_in, H, W) as in PyTorch
    x = jnp.transpose(x_nchw, (0, 2, 3, 1))           # -> NHWC
    enc1 = conv_sc(x, params[0], strides[0])
    latent = enc1
    for p, s in zip(params[1:], strides[1:]):
        latent = conv_sc(latent, p, s)
    return (jnp.transpose(latent, (0, 3, 1, 2)),      # latent (NCHW)
            jnp.transpose(enc1, (0, 3, 1, 2)))        # enc1   (NCHW)


# ----------------------------------------------------------------------------
# Pure-JAX reference (same bf16-matmul / f32-accumulate policy as the kernel)
# ----------------------------------------------------------------------------
def _ref_conv_sc(x, params, stride):
    w = params["w"].astype(jnp.bfloat16)
    y = lax.conv_general_dilated(
        x.astype(jnp.bfloat16), w, window_strides=(stride, stride),
        padding=((1, 1), (1, 1)),
        dimension_numbers=("NHWC", "HWIO", "NHWC"),
        preferred_element_type=jnp.float32)
    y = y + params["b"].reshape(1, 1, 1, -1)
    N, H, W, C = y.shape
    ch = C // GN_GROUPS
    yg = y.reshape(N, H, W, GN_GROUPS, ch)
    mean = jnp.mean(yg, axis=(1, 2, 4), keepdims=True)
    var = jnp.mean((yg - mean) ** 2, axis=(1, 2, 4), keepdims=True)
    yn = ((yg - mean) / jnp.sqrt(var + GN_EPS)).reshape(N, H, W, C)
    z = yn * params["gamma"].reshape(1, 1, 1, -1) + params["beta"].reshape(1, 1, 1, -1)
    return jnp.where(z > 0, z, LEAKY_SLOPE * z)


if __name__ == "__main__":
    key = jax.random.PRNGKey(0)
    N, C_in, H, W = 2, 4, 16, 16
    C_hid, N_S = 16, 4                                # strides -> [1, 2, 1, 2]

    kx, kp = jax.random.split(key)
    x = jax.random.normal(kx, (N, C_in, H, W), jnp.float32)
    params, strides = init_encoder_params(kp, C_in, C_hid, N_S)

    fwd = jax.jit(lambda xx, pp: encoder_forward(xx, pp, strides))
    latent, enc1 = fwd(x, params)
    latent = jax.block_until_ready(latent)
    enc1 = jax.block_until_ready(enc1)

    # reference check (layer-by-layer chain, same dtype policy)
    xr = jnp.transpose(x, (0, 2, 3, 1))
    r1 = _ref_conv_sc(xr, params[0], strides[0])
    rl = r1
    for p, s in zip(params[1:], strides[1:]):
        rl = _ref_conv_sc(rl, p, s)
    ref_latent = jnp.transpose(rl, (0, 3, 1, 2))
    ref_enc1 = jnp.transpose(r1, (0, 3, 1, 2))

    assert latent.shape == (N, C_hid, H // 4, W // 4), latent.shape
    assert enc1.shape == (N, C_hid, H, W), enc1.shape
    assert jnp.allclose(enc1, ref_enc1, atol=5e-3, rtol=5e-3)
    assert jnp.allclose(latent, ref_latent, atol=5e-3, rtol=5e-3)

    print("KERNEL_OK")
</pallas_src>

<mosaic_0001>
module attributes {stable_mosaic.version = 11 : i64} {
  func.func @_convsc_kernel(%arg0: i32, %arg1: memref<1x1x18x72xbf16, #tpu.memory_space<vmem>>, %arg2: memref<3x72x256xbf16, #tpu.memory_space<vmem>>, %arg3: memref<5x256xf32, #tpu.memory_space<vmem>>, %arg4: memref<1x16x256xf32, #tpu.memory_space<vmem>>) attributes {dimension_semantics = [#tpu.dimension_semantics<parallel>], iteration_bounds = array<i64: 2>, scalar_prefetch = 0 : i64, scratch_operands = 0 : i64, tpu.core_type = #tpu.core_type<tc>, window_params = [{transform_indices = @transform_0, window_bounds = array<i64: 1, 1, 18, 72>}, {pipeline_mode = #tpu.pipeline_mode<synchronous>, transform_indices = @transform_1, window_bounds = array<i64: 3, 72, 256>}, {pipeline_mode = #tpu.pipeline_mode<synchronous>, transform_indices = @transform_2, window_bounds = array<i64: 5, 256>}, {transform_indices = @transform_3, window_bounds = array<i64: 1, 16, 256>}]} {
    %c0 = arith.constant 0 : index
    %c0_0 = arith.constant 0 : index
    %c0_1 = arith.constant 0 : index
    %c0_2 = arith.constant 0 : index
    %0 = vector.load %arg1[%c0, %c0_0, %c0_1, %c0_2] : memref<1x1x18x72xbf16, #tpu.memory_space<vmem>>, vector<1x1x16x72xbf16>
    %1 = vector.shape_cast %0 : vector<1x1x16x72xbf16> to vector<16x72xbf16>
    %c0_3 = arith.constant 0 : index
    %c0_4 = arith.constant 0 : index
    %c0_5 = arith.constant 0 : index
    %2 = vector.load %arg2[%c0_3, %c0_4, %c0_5] : memref<3x72x256xbf16, #tpu.memory_space<vmem>>, vector<1x72x256xbf16>
    %3 = vector.shape_cast %2 : vector<1x72x256xbf16> to vector<72x256xbf16>
    %cst = arith.constant dense<0.000000e+00> : vector<16x256xf32>
    %4 = tpu.matmul %1, %3, %cst {dimension_numbers = #tpu.dot_dimension_numbers<[1], [0], [0], [1], [0, 0, 1, 1], [], []>} : vector<16x72xbf16>, vector<72x256xbf16>, vector<16x256xf32> -> vector<16x256xf32>
    %c0_6 = arith.constant 0 : index
    %c0_7 = arith.constant 0 : index
    %c1 = arith.constant 1 : index
    %c0_8 = arith.constant 0 : index
    %5 = vector.load %arg1[%c0_6, %c0_7, %c1, %c0_8] : memref<1x1x18x72xbf16, #tpu.memory_space<vmem>>, vector<1x1x16x72xbf16>
    %6 = vector.shape_cast %5 : vector<1x1x16x72xbf16> to vector<16x72xbf16>
    %c1_9 = arith.constant 1 : index
    %c0_10 = arith.constant 0 : index
    %c0_11 = arith.constant 0 : index
    %7 = vector.load %arg2[%c1_9, %c0_10, %c0_11] : memref<3x72x256xbf16, #tpu.memory_space<vmem>>, vector<1x72x256xbf16>
    %8 = vector.shape_cast %7 : vector<1x72x256xbf16> to vector<72x256xbf16>
    %cst_12 = arith.constant dense<0.000000e+00> : vector<16x256xf32>
    %9 = tpu.matmul %6, %8, %cst_12 {dimension_numbers = #tpu.dot_dimension_numbers<[1], [0], [0], [1], [0, 0, 1, 1], [], []>} : vector<16x72xbf16>, vector<72x256xbf16>, vector<16x256xf32> -> vector<16x256xf32>
    %10 = arith.addf %4, %9 : vector<16x256xf32>
    %c0_13 = arith.constant 0 : index
    %c0_14 = arith.constant 0 : index
    %c2 = arith.constant 2 : index
    %c0_15 = arith.constant 0 : index
    %11 = vector.load %arg1[%c0_13, %c0_14, %c2, %c0_15] : memref<1x1x18x72xbf16, #tpu.memory_space<vmem>>, vector<1x1x16x72xbf16>
    %12 = vector.shape_cast %11 : vector<1x1x16x72xbf16> to vector<16x72xbf16>
    %c2_16 = arith.constant 2 : index
    %c0_17 = arith.constant 0 : index
    %c0_18 = arith.constant 0 : index
    %13 = vector.load %arg2[%c2_16, %c0_17, %c0_18] : memref<3x72x256xbf16, #tpu.memory_space<vmem>>, vector<1x72x256xbf16>
    %14 = vector.shape_cast %13 : vector<1x72x256xbf16> to vector<72x256xbf16>
    %cst_19 = arith.constant dense<0.000000e+00> : vector<16x256xf32>
    %15 = tpu.matmul %12, %14, %cst_19 {dimension_numbers = #tpu.dot_dimension_numbers<[1], [0], [0], [1], [0, 0, 1, 1], [], []>} : vector<16x72xbf16>, vector<72x256xbf16>, vector<16x256xf32> -> vector<16x256xf32>
    %16 = arith.addf %10, %15 : vector<16x256xf32>
    %c0_20 = arith.constant 0 : index
    %c0_21 = arith.constant 0 : index
    %17 = vector.load %arg3[%c0_20, %c0_21] : memref<5x256xf32, #tpu.memory_space<vmem>>, vector<1x256xf32>
    %c1_22 = arith.constant 1 : index
    %c0_23 = arith.constant 0 : index
    %18 = vector.load %arg3[%c1_22, %c0_23] : memref<5x256xf32, #tpu.memory_space<vmem>>, vector<1x256xf32>
    %c2_24 = arith.constant 2 : index
    %c0_25 = arith.constant 0 : index
    %19 = vector.load %arg3[%c2_24, %c0_25] : memref<5x256xf32, #tpu.memory_space<vmem>>, vector<1x256xf32>
    %c3 = arith.constant 3 : index
    %c0_26 = arith.constant 0 : index
    %20 = vector.load %arg3[%c3, %c0_26] : memref<5x256xf32, #tpu.memory_space<vmem>>, vector<1x256xf32>
    %c4 = arith.constant 4 : index
    %c0_27 = arith.constant 0 : index
    %21 = vector.load %arg3[%c4, %c0_27] : memref<5x256xf32, #tpu.memory_space<vmem>>, vector<1x256xf32>
    %22 = vector.broadcast %17 : vector<1x256xf32> to vector<16x256xf32>
    %23 = arith.addf %16, %22 : vector<16x256xf32>
    %cst_28 = arith.constant dense<0.000000e+00> : vector<256xf32>
    %24 = vector.multi_reduction <add>, %23, %cst_28 [0] : vector<16x256xf32> to vector<256xf32>
    %25 = vector.shape_cast %24 : vector<256xf32> to vector<1x256xf32>
    %26 = arith.mulf %23, %23 : vector<16x256xf32>
    %cst_29 = arith.constant dense<0.000000e+00> : vector<256xf32>
    %27 = vector.multi_reduction <add>, %26, %cst_29 [0] : vector<16x256xf32> to vector<256xf32>
    %28 = vector.shape_cast %27 : vector<256xf32> to vector<1x256xf32>
    %29 = arith.mulf %25, %20 : vector<1x256xf32>
    %cst_30 = arith.constant dense<0.000000e+00> : vector<1xf32>
    %30 = vector.multi_reduction <add>, %29, %cst_30 [1] : vector<1x256xf32> to vector<1xf32>
    %31 = vector.shape_cast %30 : vector<1xf32> to vector<1x1xf32>
    %32 = arith.mulf %25, %21 : vector<1x256xf32>
    %cst_31 = arith.constant dense<0.000000e+00> : vector<1xf32>
    %33 = vector.multi_reduction <add>, %32, %cst_31 [1] : vector<1x256xf32> to vector<1xf32>
    %34 = vector.shape_cast %33 : vector<1xf32> to vector<1x1xf32>
    %35 = arith.mulf %28, %20 : vector<1x256xf32>
    %cst_32 = arith.constant dense<0.000000e+00> : vector<1xf32>
    %36 = vector.multi_reduction <add>, %35, %cst_32 [1] : vector<1x256xf32> to vector<1xf32>
    %37 = vector.shape_cast %36 : vector<1xf32> to vector<1x1xf32>
    %38 = arith.mulf %28, %21 : vector<1x256xf32>
    %cst_33 = arith.constant dense<0.000000e+00> : vector<1xf32>
    %39 = vector.multi_reduction <add>, %38, %cst_33 [1] : vector<1x256xf32> to vector<1xf32>
    %40 = vector.shape_cast %39 : vector<1xf32> to vector<1x1xf32>
    %cst_34 = arith.constant 4.8828125E-4 : f32
    %41 = vector.broadcast %cst_34 : f32 to vector<1x1xf32>
    %42 = arith.mulf %31, %41 : vector<1x1xf32>
    %cst_35 = arith.constant 4.8828125E-4 : f32
    %43 = vector.broadcast %cst_35 : f32 to vector<1x1xf32>
    %44 = arith.mulf %34, %43 : vector<1x1xf32>
    %cst_36 = arith.constant 4.8828125E-4 : f32
    %45 = vector.broadcast %cst_36 : f32 to vector<1x1xf32>
    %46 = arith.mulf %37, %45 : vector<1x1xf32>
    %47 = arith.mulf %42, %42 : vector<1x1xf32>
    %48 = arith.subf %46, %47 : vector<1x1xf32>
    %cst_37 = arith.constant 4.8828125E-4 : f32
    %49 = vector.broadcast %cst_37 : f32 to vector<1x1xf32>
    %50 = arith.mulf %40, %49 : vector<1x1xf32>
    %51 = arith.mulf %44, %44 : vector<1x1xf32>
    %52 = arith.subf %50, %51 : vector<1x1xf32>
    %cst_38 = arith.constant 9.99999974E-6 : f32
    %53 = vector.broadcast %cst_38 : f32 to vector<1x1xf32>
    %54 = arith.addf %48, %53 : vector<1x1xf32>
    %55 = math.rsqrt %54 : vector<1x1xf32>
    %cst_39 = arith.constant 9.99999974E-6 : f32
    %56 = vector.broadcast %cst_39 : f32 to vector<1x1xf32>
    %57 = arith.addf %52, %56 : vector<1x1xf32>
    %58 = math.rsqrt %57 : vector<1x1xf32>
    %59 = vector.broadcast %42 : vector<1x1xf32> to vector<1x256xf32>
    %60 = arith.mulf %59, %20 : vector<1x256xf32>
    %61 = vector.broadcast %44 : vector<1x1xf32> to vector<1x256xf32>
    %62 = arith.mulf %61, %21 : vector<1x256xf32>
    %63 = arith.addf %60, %62 : vector<1x256xf32>
    %64 = vector.broadcast %55 : vector<1x1xf32> to vector<1x256xf32>
    %65 = arith.mulf %64, %20 : vector<1x256xf32>
    %66 = vector.broadcast %58 : vector<1x1xf32> to vector<1x256xf32>
    %67 = arith.mulf %66, %21 : vector<1x256xf32>
    %68 = arith.addf %65, %67 : vector<1x256xf32>
    %69 = arith.mulf %68, %18 : vector<1x256xf32>
    %70 = arith.mulf %63, %69 : vector<1x256xf32>
    %71 = arith.subf %19, %70 : vector<1x256xf32>
    %72 = vector.broadcast %69 : vector<1x256xf32> to vector<16x256xf32>
    %73 = arith.mulf %23, %72 : vector<16x256xf32>
    %74 = vector.broadcast %71 : vector<1x256xf32> to vector<16x256xf32>
    %75 = arith.addf %73, %74 : vector<16x256xf32>
    %cst_40 = arith.constant 0.000000e+00 : f32
    %76 = vector.broadcast %cst_40 : f32 to vector<16x256xf32>
    %77 = arith.cmpf ogt, %75, %76 : vector<16x256xf32>
    %cst_41 = arith.constant 2.000000e-01 : f32
    %78 = vector.broadcast %cst_41 : f32 to vector<16x256xf32>
    %79 = arith.mulf %78, %75 : vector<16x256xf32>
    %80 = arith.select %77, %75, %79 : vector<16x256xi1>, vector<16x256xf32>
    %c0_42 = arith.constant 0 : index
    %c0_43 = arith.constant 0 : index
    %c0_44 = arith.constant 0 : index
    %81 = vector.load %arg4[%c0_42, %c0_43, %c0_44] : memref<1x16x256xf32, #tpu.memory_space<vmem>>, vector<1x16x256xf32>
    %82 = vector.shape_cast %81 : vector<1x16x256xf32> to vector<16x256xf32>
    %83 = vector.shape_cast %80 : vector<16x256xf32> to vector<1x16x256xf32>
    tpu.vector_store %arg4[%c0_42, %c0_43, %c0_44], %83 {strides = array<i32>} : memref<1x16x256xf32, #tpu.memory_space<vmem>>, vector<1x16x256xf32>,
    return
  }
  func.func @transform_0(%arg0: i32) -> (i32, i32, i32, i32) {
    %c0_i32 = arith.constant 0 : i32
    %c0_i32_0 = arith.constant 0 : i32
    %c0_i32_1 = arith.constant 0 : i32
    %c0_i32_2 = arith.constant 0 : i32
    return %arg0, %c0_i32, %c0_i32_0, %c0_i32_1 : i32, i32, i32, i32
  }
  func.func @transform_1(%arg0: i32) -> (i32, i32, i32) {
    %c0_i32 = arith.constant 0 : i32
    %c0_i32_0 = arith.constant 0 : i32
    %c0_i32_1 = arith.constant 0 : i32
    %c0_i32_2 = arith.constant 0 : i32
    return %c0_i32, %c0_i32_0, %c0_i32_1 : i32, i32, i32
  }
  func.func @transform_2(%arg0: i32) -> (i32, i32) {
    %c0_i32 = arith.constant 0 : i32
    %c0_i32_0 = arith.constant 0 : i32
    %c0_i32_1 = arith.constant 0 : i32
    return %c0_i32, %c0_i32_0 : i32, i32
  }
  func.func @transform_3(%arg0: i32) -> (i32, i32, i32) {
    %c0_i32 = arith.constant 0 : i32
    %c0_i32_0 = arith.constant 0 : i32
    %c0_i32_1 = arith.constant 0 : i32
    return %arg0, %c0_i32, %c0_i32_0 : i32, i32, i32
  }
}

module attributes {stable_mosaic.version = 11 : i64} {
  func.func @_convsc_kernel(%arg0: i32, %arg1: memref<1x2x9x288xbf16, #tpu.memory_space<vmem>>, %arg2: memref<3x288x128xbf16, #tpu.memory_space<vmem>>, %arg3: memref<5x128xf32, #tpu.memory_space<vmem>>, %arg4: memref<1x8x128xf32, #tpu.memory_space<vmem>>) attributes {dimension_semantics = [#tpu.dimension_semantics<parallel>], iteration_bounds = array<i64: 2>, scalar_prefetch = 0 : i64, scratch_operands = 0 : i64, tpu.core_type = #tpu.core_type<tc>, window_params = [{transform_indices = @transform_0, window_bounds = array<i64: 1, 2, 9, 288>}, {pipeline_mode = #tpu.pipeline_mode<synchronous>, transform_indices = @transform_1, window_bounds = array<i64: 3, 288, 128>}, {pipeline_mode = #tpu.pipeline_mode<synchronous>, transform_indices = @transform_2, window_bounds = array<i64: 5, 128>}, {transform_indices = @transform_3, window_bounds = array<i64: 1, 8, 128>}]} {
    %c0 = arith.constant 0 : index
    %c0_0 = arith.constant 0 : index
    %c0_1 = arith.constant 0 : index
    %c0_2 = arith.constant 0 : index
    %0 = vector.load %arg1[%c0, %c0_0, %c0_1, %c0_2] : memref<1x2x9x288xbf16, #tpu.memory_space<vmem>>, vector<1x1x8x288xbf16>
    %1 = vector.shape_cast %0 : vector<1x1x8x288xbf16> to vector<8x288xbf16>
    %c0_3 = arith.constant 0 : index
    %c0_4 = arith.constant 0 : index
    %c0_5 = arith.constant 0 : index
    %2 = vector.load %arg2[%c0_3, %c0_4, %c0_5] : memref<3x288x128xbf16, #tpu.memory_space<vmem>>, vector<1x288x128xbf16>
    %3 = vector.shape_cast %2 : vector<1x288x128xbf16> to vector<288x128xbf16>
    %cst = arith.constant dense<0.000000e+00> : vector<8x128xf32>
    %4 = tpu.matmul %1, %3, %cst {dimension_numbers = #tpu.dot_dimension_numbers<[1], [0], [0], [1], [0, 0, 1, 1], [], []>} : vector<8x288xbf16>, vector<288x128xbf16>, vector<8x128xf32> -> vector<8x128xf32>
    %c0_6 = arith.constant 0 : index
    %c1 = arith.constant 1 : index
    %c0_7 = arith.constant 0 : index
    %c0_8 = arith.constant 0 : index
    %5 = vector.load %arg1[%c0_6, %c1, %c0_7, %c0_8] : memref<1x2x9x288xbf16, #tpu.memory_space<vmem>>, vector<1x1x8x288xbf16>
    %6 = vector.shape_cast %5 : vector<1x1x8x288xbf16> to vector<8x288xbf16>
    %c1_9 = arith.constant 1 : index
    %c0_10 = arith.constant 0 : index
    %c0_11 = arith.constant 0 : index
    %7 = vector.load %arg2[%c1_9, %c0_10, %c0_11] : memref<3x288x128xbf16, #tpu.memory_space<vmem>>, vector<1x288x128xbf16>
    %8 = vector.shape_cast %7 : vector<1x288x128xbf16> to vector<288x128xbf16>
    %cst_12 = arith.constant dense<0.000000e+00> : vector<8x128xf32>
    %9 = tpu.matmul %6, %8, %cst_12 {dimension_numbers = #tpu.dot_dimension_numbers<[1], [0], [0], [1], [0, 0, 1, 1], [], []>} : vector<8x288xbf16>, vector<288x128xbf16>, vector<8x128xf32> -> vector<8x128xf32>
    %10 = arith.addf %4, %9 : vector<8x128xf32>
    %c0_13 = arith.constant 0 : index
    %c0_14 = arith.constant 0 : index
    %c1_15 = arith.constant 1 : index
    %c0_16 = arith.constant 0 : index
    %11 = vector.load %arg1[%c0_13, %c0_14, %c1_15, %c0_16] : memref<1x2x9x288xbf16, #tpu.memory_space<vmem>>, vector<1x1x8x288xbf16>
    %12 = vector.shape_cast %11 : vector<1x1x8x288xbf16> to vector<8x288xbf16>
    %c2 = arith.constant 2 : index
    %c0_17 = arith.constant 0 : index
    %c0_18 = arith.constant 0 : index
    %13 = vector.load %arg2[%c2, %c0_17, %c0_18] : memref<3x288x128xbf16, #tpu.memory_space<vmem>>, vector<1x288x128xbf16>
    %14 = vector.shape_cast %13 : vector<1x288x128xbf16> to vector<288x128xbf16>
    %cst_19 = arith.constant dense<0.000000e+00> : vector<8x128xf32>
    %15 = tpu.matmul %12, %14, %cst_19 {dimension_numbers = #tpu.dot_dimension_numbers<[1], [0], [0], [1], [0, 0, 1, 1], [], []>} : vector<8x288xbf16>, vector<288x128xbf16>, vector<8x128xf32> -> vector<8x128xf32>
    %16 = arith.addf %10, %15 : vector<8x128xf32>
    %c0_20 = arith.constant 0 : index
    %c0_21 = arith.constant 0 : index
    %17 = vector.load %arg3[%c0_20, %c0_21] : memref<5x128xf32, #tpu.memory_space<vmem>>, vector<1x128xf32>
    %c1_22 = arith.constant 1 : index
    %c0_23 = arith.constant 0 : index
    %18 = vector.load %arg3[%c1_22, %c0_23] : memref<5x128xf32, #tpu.memory_space<vmem>>, vector<1x128xf32>
    %c2_24 = arith.constant 2 : index
    %c0_25 = arith.constant 0 : index
    %19 = vector.load %arg3[%c2_24, %c0_25] : memref<5x128xf32, #tpu.memory_space<vmem>>, vector<1x128xf32>
    %c3 = arith.constant 3 : index
    %c0_26 = arith.constant 0 : index
    %20 = vector.load %arg3[%c3, %c0_26] : memref<5x128xf32, #tpu.memory_space<vmem>>, vector<1x128xf32>
    %c4 = arith.constant 4 : index
    %c0_27 = arith.constant 0 : index
    %21 = vector.load %arg3[%c4, %c0_27] : memref<5x128xf32, #tpu.memory_space<vmem>>, vector<1x128xf32>
    %22 = vector.broadcast %17 : vector<1x128xf32> to vector<8x128xf32>
    %23 = arith.addf %16, %22 : vector<8x128xf32>
    %cst_28 = arith.constant dense<0.000000e+00> : vector<128xf32>
    %24 = vector.multi_reduction <add>, %23, %cst_28 [0] : vector<8x128xf32> to vector<128xf32>
    %25 = vector.shape_cast %24 : vector<128xf32> to vector<1x128xf32>
    %26 = arith.mulf %23, %23 : vector<8x128xf32>
    %cst_29 = arith.constant dense<0.000000e+00> : vector<128xf32>
    %27 = vector.multi_reduction <add>, %26, %cst_29 [0] : vector<8x128xf32> to vector<128xf32>
    %28 = vector.shape_cast %27 : vector<128xf32> to vector<1x128xf32>
    %29 = arith.mulf %25, %20 : vector<1x128xf32>
    %cst_30 = arith.constant dense<0.000000e+00> : vector<1xf32>
    %30 = vector.multi_reduction <add>, %29, %cst_30 [1] : vector<1x128xf32> to vector<1xf32>
    %31 = vector.shape_cast %30 : vector<1xf32> to vector<1x1xf32>
    %32 = arith.mulf %25, %21 : vector<1x128xf32>
    %cst_31 = arith.constant dense<0.000000e+00> : vector<1xf32>
    %33 = vector.multi_reduction <add>, %32, %cst_31 [1] : vector<1x128xf32> to vector<1xf32>
    %34 = vector.shape_cast %33 : vector<1xf32> to vector<1x1xf32>
    %35 = arith.mulf %28, %20 : vector<1x128xf32>
    %cst_32 = arith.constant dense<0.000000e+00> : vector<1xf32>
    %36 = vector.multi_reduction <add>, %35, %cst_32 [1] : vector<1x128xf32> to vector<1xf32>
    %37 = vector.shape_cast %36 : vector<1xf32> to vector<1x1xf32>
    %38 = arith.mulf %28, %21 : vector<1x128xf32>
    %cst_33 = arith.constant dense<0.000000e+00> : vector<1xf32>
    %39 = vector.multi_reduction <add>, %38, %cst_33 [1] : vector<1x128xf32> to vector<1xf32>
    %40 = vector.shape_cast %39 : vector<1xf32> to vector<1x1xf32>
    %cst_34 = arith.constant 0.001953125 : f32
    %41 = vector.broadcast %cst_34 : f32 to vector<1x1xf32>
    %42 = arith.mulf %31, %41 : vector<1x1xf32>
    %cst_35 = arith.constant 0.001953125 : f32
    %43 = vector.broadcast %cst_35 : f32 to vector<1x1xf32>
    %44 = arith.mulf %34, %43 : vector<1x1xf32>
    %cst_36 = arith.constant 0.001953125 : f32
    %45 = vector.broadcast %cst_36 : f32 to vector<1x1xf32>
    %46 = arith.mulf %37, %45 : vector<1x1xf32>
    %47 = arith.mulf %42, %42 : vector<1x1xf32>
    %48 = arith.subf %46, %47 : vector<1x1xf32>
    %cst_37 = arith.constant 0.001953125 : f32
    %49 = vector.broadcast %cst_37 : f32 to vector<1x1xf32>
    %50 = arith.mulf %40, %49 : vector<1x1xf32>
    %51 = arith.mulf %44, %44 : vector<1x1xf32>
    %52 = arith.subf %50, %51 : vector<1x1xf32>
    %cst_38 = arith.constant 9.99999974E-6 : f32
    %53 = vector.broadcast %cst_38 : f32 to vector<1x1xf32>
    %54 = arith.addf %48, %53 : vector<1x1xf32>
    %55 = math.rsqrt %54 : vector<1x1xf32>
    %cst_39 = arith.constant 9.99999974E-6 : f32
    %56 = vector.broadcast %cst_39 : f32 to vector<1x1xf32>
    %57 = arith.addf %52, %56 : vector<1x1xf32>
    %58 = math.rsqrt %57 : vector<1x1xf32>
    %59 = vector.broadcast %42 : vector<1x1xf32> to vector<1x128xf32>
    %60 = arith.mulf %59, %20 : vector<1x128xf32>
    %61 = vector.broadcast %44 : vector<1x1xf32> to vector<1x128xf32>
    %62 = arith.mulf %61, %21 : vector<1x128xf32>
    %63 = arith.addf %60, %62 : vector<1x128xf32>
    %64 = vector.broadcast %55 : vector<1x1xf32> to vector<1x128xf32>
    %65 = arith.mulf %64, %20 : vector<1x128xf32>
    %66 = vector.broadcast %58 : vector<1x1xf32> to vector<1x128xf32>
    %67 = arith.mulf %66, %21 : vector<1x128xf32>
    %68 = arith.addf %65, %67 : vector<1x128xf32>
    %69 = arith.mulf %68, %18 : vector<1x128xf32>
    %70 = arith.mulf %63, %69 : vector<1x128xf32>
    %71 = arith.subf %19, %70 : vector<1x128xf32>
    %72 = vector.broadcast %69 : vector<1x128xf32> to vector<8x128xf32>
    %73 = arith.mulf %23, %72 : vector<8x128xf32>
    %74 = vector.broadcast %71 : vector<1x128xf32> to vector<8x128xf32>
    %75 = arith.addf %73, %74 : vector<8x128xf32>
    %cst_40 = arith.constant 0.000000e+00 : f32
    %76 = vector.broadcast %cst_40 : f32 to vector<8x128xf32>
    %77 = arith.cmpf ogt, %75, %76 : vector<8x128xf32>
    %cst_41 = arith.constant 2.000000e-01 : f32
    %78 = vector.broadcast %cst_41 : f32 to vector<8x128xf32>
    %79 = arith.mulf %78, %75 : vector<8x128xf32>
    %80 = arith.select %77, %75, %79 : vector<8x128xi1>, vector<8x128xf32>
    %c0_42 = arith.constant 0 : index
    %c0_43 = arith.constant 0 : index
    %c0_44 = arith.constant 0 : index
    %81 = vector.load %arg4[%c0_42, %c0_43, %c0_44] : memref<1x8x128xf32, #tpu.memory_space<vmem>>, vector<1x8x128xf32>
    %82 = vector.shape_cast %81 : vector<1x8x128xf32> to vector<8x128xf32>
    %83 = vector.shape_cast %80 : vector<8x128xf32> to vector<1x8x128xf32>
    tpu.vector_store %arg4[%c0_42, %c0_43, %c0_44], %83 {strides = array<i32>} : memref<1x8x128xf32, #tpu.memory_space<vmem>>, vector<1x8x128xf32>,
    return
  }
  func.func @transform_0(%arg0: i32) -> (i32, i32, i32, i32) {
    %c0_i32 = arith.constant 0 : i32
    %c0_i32_0 = arith.constant 0 : i32
    %c0_i32_1 = arith.constant 0 : i32
    %c0_i32_2 = arith.constant 0 : i32
    return %arg0, %c0_i32, %c0_i32_0, %c0_i32_1 : i32, i32, i32, i32
  }
  func.func @transform_1(%arg0: i32) -> (i32, i32, i32) {
    %c0_i32 = arith.constant 0 : i32
    %c0_i32_0 = arith.constant 0 : i32
    %c0_i32_1 = arith.constant 0 : i32
    %c0_i32_2 = arith.constant 0 : i32
    return %c0_i32, %c0_i32_0, %c0_i32_1 : i32, i32, i32
  }
  func.func @transform_2(%arg0: i32) -> (i32, i32) {
    %c0_i32 = arith.constant 0 : i32
    %c0_i32_0 = arith.constant 0 : i32
    %c0_i32_1 = arith.constant 0 : i32
    return %c0_i32, %c0_i32_0 : i32, i32
  }
  func.func @transform_3(%arg0: i32) -> (i32, i32, i32) {
    %c0_i32 = arith.constant 0 : i32
    %c0_i32_0 = arith.constant 0 : i32
    %c0_i32_1 = arith.constant 0 : i32
    return %arg0, %c0_i32, %c0_i32_0 : i32, i32, i32
  }
}

module attributes {stable_mosaic.version = 11 : i64} {
  func.func @_convsc_kernel(%arg0: i32, %arg1: memref<1x1x10x160xbf16, #tpu.memory_space<vmem>>, %arg2: memref<3x160x128xbf16, #tpu.memory_space<vmem>>, %arg3: memref<5x128xf32, #tpu.memory_space<vmem>>, %arg4: memref<1x8x128xf32, #tpu.memory_space<vmem>>) attributes {dimension_semantics = [#tpu.dimension_semantics<parallel>], iteration_bounds = array<i64: 2>, scalar_prefetch = 0 : i64, scratch_operands = 0 : i64, tpu.core_type = #tpu.core_type<tc>, window_params = [{transform_indices = @transform_0, window_bounds = array<i64: 1, 1, 10, 160>}, {pipeline_mode = #tpu.pipeline_mode<synchronous>, transform_indices = @transform_1, window_bounds = array<i64: 3, 160, 128>}, {pipeline_mode = #tpu.pipeline_mode<synchronous>, transform_indices = @transform_2, window_bounds = array<i64: 5, 128>}, {transform_indices = @transform_3, window_bounds = array<i64: 1, 8, 128>}]} {
    %c0 = arith.constant 0 : index
    %c0_0 = arith.constant 0 : index
    %c0_1 = arith.constant 0 : index
    %c0_2 = arith.constant 0 : index
    %0 = vector.load %arg1[%c0, %c0_0, %c0_1, %c0_2] : memref<1x1x10x160xbf16, #tpu.memory_space<vmem>>, vector<1x1x8x160xbf16>
    %1 = vector.shape_cast %0 : vector<1x1x8x160xbf16> to vector<8x160xbf16>
    %c0_3 = arith.constant 0 : index
    %c0_4 = arith.constant 0 : index
    %c0_5 = arith.constant 0 : index
    %2 = vector.load %arg2[%c0_3, %c0_4, %c0_5] : memref<3x160x128xbf16, #tpu.memory_space<vmem>>, vector<1x160x128xbf16>
    %3 = vector.shape_cast %2 : vector<1x160x128xbf16> to vector<160x128xbf16>
    %cst = arith.constant dense<0.000000e+00> : vector<8x128xf32>
    %4 = tpu.matmul %1, %3, %cst {dimension_numbers = #tpu.dot_dimension_numbers<[1], [0], [0], [1], [0, 0, 1, 1], [], []>} : vector<8x160xbf16>, vector<160x128xbf16>, vector<8x128xf32> -> vector<8x128xf32>
    %c0_6 = arith.constant 0 : index
    %c0_7 = arith.constant 0 : index
    %c1 = arith.constant 1 : index
    %c0_8 = arith.constant 0 : index
    %5 = vector.load %arg1[%c0_6, %c0_7, %c1, %c0_8] : memref<1x1x10x160xbf16, #tpu.memory_space<vmem>>, vector<1x1x8x160xbf16>
    %6 = vector.shape_cast %5 : vector<1x1x8x160xbf16> to vector<8x160xbf16>
    %c1_9 = arith.constant 1 : index
    %c0_10 = arith.constant 0 : index
    %c0_11 = arith.constant 0 : index
    %7 = vector.load %arg2[%c1_9, %c0_10, %c0_11] : memref<3x160x128xbf16, #tpu.memory_space<vmem>>, vector<1x160x128xbf16>
    %8 = vector.shape_cast %7 : vector<1x160x128xbf16> to vector<160x128xbf16>
    %cst_12 = arith.constant dense<0.000000e+00> : vector<8x128xf32>
    %9 = tpu.matmul %6, %8, %cst_12 {dimension_numbers = #tpu.dot_dimension_numbers<[1], [0], [0], [1], [0, 0, 1, 1], [], []>} : vector<8x160xbf16>, vector<160x128xbf16>, vector<8x128xf32> -> vector<8x128xf32>
    %10 = arith.addf %4, %9 : vector<8x128xf32>
    %c0_13 = arith.constant 0 : index
    %c0_14 = arith.constant 0 : index
    %c2 = arith.constant 2 : index
    %c0_15 = arith.constant 0 : index
    %11 = vector.load %arg1[%c0_13, %c0_14, %c2, %c0_15] : memref<1x1x10x160xbf16, #tpu.memory_space<vmem>>, vector<1x1x8x160xbf16>
    %12 = vector.shape_cast %11 : vector<1x1x8x160xbf16> to vector<8x160xbf16>
    %c2_16 = arith.constant 2 : index
    %c0_17 = arith.constant 0 : index
    %c0_18 = arith.constant 0 : index
    %13 = vector.load %arg2[%c2_16, %c0_17, %c0_18] : memref<3x160x128xbf16, #tpu.memory_space<vmem>>, vector<1x160x128xbf16>
    %14 = vector.shape_cast %13 : vector<1x160x128xbf16> to vector<160x128xbf16>
    %cst_19 = arith.constant dense<0.000000e+00> : vector<8x128xf32>
    %15 = tpu.matmul %12, %14, %cst_19 {dimension_numbers = #tpu.dot_dimension_numbers<[1], [0], [0], [1], [0, 0, 1, 1], [], []>} : vector<8x160xbf16>, vector<160x128xbf16>, vector<8x128xf32> -> vector<8x128xf32>
    %16 = arith.addf %10, %15 : vector<8x128xf32>
    %c0_20 = arith.constant 0 : index
    %c0_21 = arith.constant 0 : index
    %17 = vector.load %arg3[%c0_20, %c0_21] : memref<5x128xf32, #tpu.memory_space<vmem>>, vector<1x128xf32>
    %c1_22 = arith.constant 1 : index
    %c0_23 = arith.constant 0 : index
    %18 = vector.load %arg3[%c1_22, %c0_23] : memref<5x128xf32, #tpu.memory_space<vmem>>, vector<1x128xf32>
    %c2_24 = arith.constant 2 : index
    %c0_25 = arith.constant 0 : index
    %19 = vector.load %arg3[%c2_24, %c0_25] : memref<5x128xf32, #tpu.memory_space<vmem>>, vector<1x128xf32>
    %c3 = arith.constant 3 : index
    %c0_26 = arith.constant 0 : index
    %20 = vector.load %arg3[%c3, %c0_26] : memref<5x128xf32, #tpu.memory_space<vmem>>, vector<1x128xf32>
    %c4 = arith.constant 4 : index
    %c0_27 = arith.constant 0 : index
    %21 = vector.load %arg3[%c4, %c0_27] : memref<5x128xf32, #tpu.memory_space<vmem>>, vector<1x128xf32>
    %22 = vector.broadcast %17 : vector<1x128xf32> to vector<8x128xf32>
    %23 = arith.addf %16, %22 : vector<8x128xf32>
    %cst_28 = arith.constant dense<0.000000e+00> : vector<128xf32>
    %24 = vector.multi_reduction <add>, %23, %cst_28 [0] : vector<8x128xf32> to vector<128xf32>
    %25 = vector.shape_cast %24 : vector<128xf32> to vector<1x128xf32>
    %26 = arith.mulf %23, %23 : vector<8x128xf32>
    %cst_29 = arith.constant dense<0.000000e+00> : vector<128xf32>
    %27 = vector.multi_reduction <add>, %26, %cst_29 [0] : vector<8x128xf32> to vector<128xf32>
    %28 = vector.shape_cast %27 : vector<128xf32> to vector<1x128xf32>
    %29 = arith.mulf %25, %20 : vector<1x128xf32>
    %cst_30 = arith.constant dense<0.000000e+00> : vector<1xf32>
    %30 = vector.multi_reduction <add>, %29, %cst_30 [1] : vector<1x128xf32> to vector<1xf32>
    %31 = vector.shape_cast %30 : vector<1xf32> to vector<1x1xf32>
    %32 = arith.mulf %25, %21 : vector<1x128xf32>
    %cst_31 = arith.constant dense<0.000000e+00> : vector<1xf32>
    %33 = vector.multi_reduction <add>, %32, %cst_31 [1] : vector<1x128xf32> to vector<1xf32>
    %34 = vector.shape_cast %33 : vector<1xf32> to vector<1x1xf32>
    %35 = arith.mulf %28, %20 : vector<1x128xf32>
    %cst_32 = arith.constant dense<0.000000e+00> : vector<1xf32>
    %36 = vector.multi_reduction <add>, %35, %cst_32 [1] : vector<1x128xf32> to vector<1xf32>
    %37 = vector.shape_cast %36 : vector<1xf32> to vector<1x1xf32>
    %38 = arith.mulf %28, %21 : vector<1x128xf32>
    %cst_33 = arith.constant dense<0.000000e+00> : vector<1xf32>
    %39 = vector.multi_reduction <add>, %38, %cst_33 [1] : vector<1x128xf32> to vector<1xf32>
    %40 = vector.shape_cast %39 : vector<1xf32> to vector<1x1xf32>
    %cst_34 = arith.constant 0.001953125 : f32
    %41 = vector.broadcast %cst_34 : f32 to vector<1x1xf32>
    %42 = arith.mulf %31, %41 : vector<1x1xf32>
    %cst_35 = arith.constant 0.001953125 : f32
    %43 = vector.broadcast %cst_35 : f32 to vector<1x1xf32>
    %44 = arith.mulf %34, %43 : vector<1x1xf32>
    %cst_36 = arith.constant 0.001953125 : f32
    %45 = vector.broadcast %cst_36 : f32 to vector<1x1xf32>
    %46 = arith.mulf %37, %45 : vector<1x1xf32>
    %47 = arith.mulf %42, %42 : vector<1x1xf32>
    %48 = arith.subf %46, %47 : vector<1x1xf32>
    %cst_37 = arith.constant 0.001953125 : f32
    %49 = vector.broadcast %cst_37 : f32 to vector<1x1xf32>
    %50 = arith.mulf %40, %49 : vector<1x1xf32>
    %51 = arith.mulf %44, %44 : vector<1x1xf32>
    %52 = arith.subf %50, %51 : vector<1x1xf32>
    %cst_38 = arith.constant 9.99999974E-6 : f32
    %53 = vector.broadcast %cst_38 : f32 to vector<1x1xf32>
    %54 = arith.addf %48, %53 : vector<1x1xf32>
    %55 = math.rsqrt %54 : vector<1x1xf32>
    %cst_39 = arith.constant 9.99999974E-6 : f32
    %56 = vector.broadcast %cst_39 : f32 to vector<1x1xf32>
    %57 = arith.addf %52, %56 : vector<1x1xf32>
    %58 = math.rsqrt %57 : vector<1x1xf32>
    %59 = vector.broadcast %42 : vector<1x1xf32> to vector<1x128xf32>
    %60 = arith.mulf %59, %20 : vector<1x128xf32>
    %61 = vector.broadcast %44 : vector<1x1xf32> to vector<1x128xf32>
    %62 = arith.mulf %61, %21 : vector<1x128xf32>
    %63 = arith.addf %60, %62 : vector<1x128xf32>
    %64 = vector.broadcast %55 : vector<1x1xf32> to vector<1x128xf32>
    %65 = arith.mulf %64, %20 : vector<1x128xf32>
    %66 = vector.broadcast %58 : vector<1x1xf32> to vector<1x128xf32>
    %67 = arith.mulf %66, %21 : vector<1x128xf32>
    %68 = arith.addf %65, %67 : vector<1x128xf32>
    %69 = arith.mulf %68, %18 : vector<1x128xf32>
    %70 = arith.mulf %63, %69 : vector<1x128xf32>
    %71 = arith.subf %19, %70 : vector<1x128xf32>
    %72 = vector.broadcast %69 : vector<1x128xf32> to vector<8x128xf32>
    %73 = arith.mulf %23, %72 : vector<8x128xf32>
    %74 = vector.broadcast %71 : vector<1x128xf32> to vector<8x128xf32>
    %75 = arith.addf %73, %74 : vector<8x128xf32>
    %cst_40 = arith.constant 0.000000e+00 : f32
    %76 = vector.broadcast %cst_40 : f32 to vector<8x128xf32>
    %77 = arith.cmpf ogt, %75, %76 : vector<8x128xf32>
    %cst_41 = arith.constant 2.000000e-01 : f32
    %78 = vector.broadcast %cst_41 : f32 to vector<8x128xf32>
    %79 = arith.mulf %78, %75 : vector<8x128xf32>
    %80 = arith.select %77, %75, %79 : vector<8x128xi1>, vector<8x128xf32>
    %c0_42 = arith.constant 0 : index
    %c0_43 = arith.constant 0 : index
    %c0_44 = arith.constant 0 : index
    %81 = vector.load %arg4[%c0_42, %c0_43, %c0_44] : memref<1x8x128xf32, #tpu.memory_space<vmem>>, vector<1x8x128xf32>
    %82 = vector.shape_cast %81 : vector<1x8x128xf32> to vector<8x128xf32>
    %83 = vector.shape_cast %80 : vector<8x128xf32> to vector<1x8x128xf32>
    tpu.vector_store %arg4[%c0_42, %c0_43, %c0_44], %83 {strides = array<i32>} : memref<1x8x128xf32, #tpu.memory_space<vmem>>, vector<1x8x128xf32>,
    return
  }
  func.func @transform_0(%arg0: i32) -> (i32, i32, i32, i32) {
    %c0_i32 = arith.constant 0 : i32
    %c0_i32_0 = arith.constant 0 : i32
    %c0_i32_1 = arith.constant 0 : i32
    %c0_i32_2 = arith.constant 0 : i32
    return %arg0, %c0_i32, %c0_i32_0, %c0_i32_1 : i32, i32, i32, i32
  }
  func.func @transform_1(%arg0: i32) -> (i32, i32, i32) {
    %c0_i32 = arith.constant 0 : i32
    %c0_i32_0 = arith.constant 0 : i32
    %c0_i32_1 = arith.constant 0 : i32
    %c0_i32_2 = arith.constant 0 : i32
    return %c0_i32, %c0_i32_0, %c0_i32_1 : i32, i32, i32
  }
  func.func @transform_2(%arg0: i32) -> (i32, i32) {
    %c0_i32 = arith.constant 0 : i32
    %c0_i32_0 = arith.constant 0 : i32
    %c0_i32_1 = arith.constant 0 : i32
    return %c0_i32, %c0_i32_0 : i32, i32
  }
  func.func @transform_3(%arg0: i32) -> (i32, i32, i32) {
    %c0_i32 = arith.constant 0 : i32
    %c0_i32_0 = arith.constant 0 : i32
    %c0_i32_1 = arith.constant 0 : i32
    return %arg0, %c0_i32, %c0_i32_0 : i32, i32, i32
  }
}

module attributes {stable_mosaic.version = 11 : i64} {
  func.func @_convsc_kernel(%arg0: i32, %arg1: memref<1x2x5x160xbf16, #tpu.memory_space<vmem>>, %arg2: memref<3x160x64xbf16, #tpu.memory_space<vmem>>, %arg3: memref<5x64xf32, #tpu.memory_space<vmem>>, %arg4: memref<1x4x64xf32, #tpu.memory_space<vmem>>) attributes {dimension_semantics = [#tpu.dimension_semantics<parallel>], iteration_bounds = array<i64: 2>, scalar_prefetch = 0 : i64, scratch_operands = 0 : i64, tpu.core_type = #tpu.core_type<tc>, window_params = [{transform_indices = @transform_0, window_bounds = array<i64: 1, 2, 5, 160>}, {pipeline_mode = #tpu.pipeline_mode<synchronous>, transform_indices = @transform_1, window_bounds = array<i64: 3, 160, 64>}, {pipeline_mode = #tpu.pipeline_mode<synchronous>, transform_indices = @transform_2, window_bounds = array<i64: 5, 64>}, {transform_indices = @transform_3, window_bounds = array<i64: 1, 4, 64>}]} {
    %c0 = arith.constant 0 : index
    %c0_0 = arith.constant 0 : index
    %c0_1 = arith.constant 0 : index
    %c0_2 = arith.constant 0 : index
    %0 = vector.load %arg1[%c0, %c0_0, %c0_1, %c0_2] : memref<1x2x5x160xbf16, #tpu.memory_space<vmem>>, vector<1x1x4x160xbf16>
    %1 = vector.shape_cast %0 : vector<1x1x4x160xbf16> to vector<4x160xbf16>
    %c0_3 = arith.constant 0 : index
    %c0_4 = arith.constant 0 : index
    %c0_5 = arith.constant 0 : index
    %2 = vector.load %arg2[%c0_3, %c0_4, %c0_5] : memref<3x160x64xbf16, #tpu.memory_space<vmem>>, vector<1x160x64xbf16>
    %3 = vector.shape_cast %2 : vector<1x160x64xbf16> to vector<160x64xbf16>
    %cst = arith.constant dense<0.000000e+00> : vector<4x64xf32>
    %4 = tpu.matmul %1, %3, %cst {dimension_numbers = #tpu.dot_dimension_numbers<[1], [0], [0], [1], [0, 0, 1, 1], [], []>} : vector<4x160xbf16>, vector<160x64xbf16>, vector<4x64xf32> -> vector<4x64xf32>
    %c0_6 = arith.constant 0 : index
    %c1 = arith.constant 1 : index
    %c0_7 = arith.constant 0 : index
    %c0_8 = arith.constant 0 : index
    %5 = vector.load %arg1[%c0_6, %c1, %c0_7, %c0_8] : memref<1x2x5x160xbf16, #tpu.memory_space<vmem>>, vector<1x1x4x160xbf16>
    %6 = vector.shape_cast %5 : vector<1x1x4x160xbf16> to vector<4x160xbf16>
    %c1_9 = arith.constant 1 : index
    %c0_10 = arith.constant 0 : index
    %c0_11 = arith.constant 0 : index
    %7 = vector.load %arg2[%c1_9, %c0_10, %c0_11] : memref<3x160x64xbf16, #tpu.memory_space<vmem>>, vector<1x160x64xbf16>
    %8 = vector.shape_cast %7 : vector<1x160x64xbf16> to vector<160x64xbf16>
    %cst_12 = arith.constant dense<0.000000e+00> : vector<4x64xf32>
    %9 = tpu.matmul %6, %8, %cst_12 {dimension_numbers = #tpu.dot_dimension_numbers<[1], [0], [0], [1], [0, 0, 1, 1], [], []>} : vector<4x160xbf16>, vector<160x64xbf16>, vector<4x64xf32> -> vector<4x64xf32>
    %10 = arith.addf %4, %9 : vector<4x64xf32>
    %c0_13 = arith.constant 0 : index
    %c0_14 = arith.constant 0 : index
    %c1_15 = arith.constant 1 : index
    %c0_16 = arith.constant 0 : index
    %11 = vector.load %arg1[%c0_13, %c0_14, %c1_15, %c0_16] : memref<1x2x5x160xbf16, #tpu.memory_space<vmem>>, vector<1x1x4x160xbf16>
    %12 = vector.shape_cast %11 : vector<1x1x4x160xbf16> to vector<4x160xbf16>
    %c2 = arith.constant 2 : index
    %c0_17 = arith.constant 0 : index
    %c0_18 = arith.constant 0 : index
    %13 = vector.load %arg2[%c2, %c0_17, %c0_18] : memref<3x160x64xbf16, #tpu.memory_space<vmem>>, vector<1x160x64xbf16>
    %14 = vector.shape_cast %13 : vector<1x160x64xbf16> to vector<160x64xbf16>
    %cst_19 = arith.constant dense<0.000000e+00> : vector<4x64xf32>
    %15 = tpu.matmul %12, %14, %cst_19 {dimension_numbers = #tpu.dot_dimension_numbers<[1], [0], [0], [1], [0, 0, 1, 1], [], []>} : vector<4x160xbf16>, vector<160x64xbf16>, vector<4x64xf32> -> vector<4x64xf32>
    %16 = arith.addf %10, %15 : vector<4x64xf32>
    %c0_20 = arith.constant 0 : index
    %c0_21 = arith.constant 0 : index
    %17 = vector.load %arg3[%c0_20, %c0_21] : memref<5x64xf32, #tpu.memory_space<vmem>>, vector<1x64xf32>
    %c1_22 = arith.constant 1 : index
    %c0_23 = arith.constant 0 : index
    %18 = vector.load %arg3[%c1_22, %c0_23] : memref<5x64xf32, #tpu.memory_space<vmem>>, vector<1x64xf32>
    %c2_24 = arith.constant 2 : index
    %c0_25 = arith.constant 0 : index
    %19 = vector.load %arg3[%c2_24, %c0_25] : memref<5x64xf32, #tpu.memory_space<vmem>>, vector<1x64xf32>
    %c3 = arith.constant 3 : index
    %c0_26 = arith.constant 0 : index
    %20 = vector.load %arg3[%c3, %c0_26] : memref<5x64xf32, #tpu.memory_space<vmem>>, vector<1x64xf32>
    %c4 = arith.constant 4 : index
    %c0_27 = arith.constant 0 : index
    %21 = vector.load %arg3[%c4, %c0_27] : memref<5x64xf32, #tpu.memory_space<vmem>>, vector<1x64xf32>
    %22 = vector.broadcast %17 : vector<1x64xf32> to vector<4x64xf32>
    %23 = arith.addf %16, %22 : vector<4x64xf32>
    %cst_28 = arith.constant dense<0.000000e+00> : vector<64xf32>
    %24 = vector.multi_reduction <add>, %23, %cst_28 [0] : vector<4x64xf32> to vector<64xf32>
    %25 = vector.shape_cast %24 : vector<64xf32> to vector<1x64xf32>
    %26 = arith.mulf %23, %23 : vector<4x64xf32>
    %cst_29 = arith.constant dense<0.000000e+00> : vector<64xf32>
    %27 = vector.multi_reduction <add>, %26, %cst_29 [0] : vector<4x64xf32> to vector<64xf32>
    %28 = vector.shape_cast %27 : vector<64xf32> to vector<1x64xf32>
    %29 = arith.mulf %25, %20 : vector<1x64xf32>
    %cst_30 = arith.constant dense<0.000000e+00> : vector<1xf32>
    %30 = vector.multi_reduction <add>, %29, %cst_30 [1] : vector<1x64xf32> to vector<1xf32>
    %31 = vector.shape_cast %30 : vector<1xf32> to vector<1x1xf32>
    %32 = arith.mulf %25, %21 : vector<1x64xf32>
    %cst_31 = arith.constant dense<0.000000e+00> : vector<1xf32>
    %33 = vector.multi_reduction <add>, %32, %cst_31 [1] : vector<1x64xf32> to vector<1xf32>
    %34 = vector.shape_cast %33 : vector<1xf32> to vector<1x1xf32>
    %35 = arith.mulf %28, %20 : vector<1x64xf32>
    %cst_32 = arith.constant dense<0.000000e+00> : vector<1xf32>
    %36 = vector.multi_reduction <add>, %35, %cst_32 [1] : vector<1x64xf32> to vector<1xf32>
    %37 = vector.shape_cast %36 : vector<1xf32> to vector<1x1xf32>
    %38 = arith.mulf %28, %21 : vector<1x64xf32>
    %cst_33 = arith.constant dense<0.000000e+00> : vector<1xf32>
    %39 = vector.multi_reduction <add>, %38, %cst_33 [1] : vector<1x64xf32> to vector<1xf32>
    %40 = vector.shape_cast %39 : vector<1xf32> to vector<1x1xf32>
    %cst_34 = arith.constant 7.812500e-03 : f32
    %41 = vector.broadcast %cst_34 : f32 to vector<1x1xf32>
    %42 = arith.mulf %31, %41 : vector<1x1xf32>
    %cst_35 = arith.constant 7.812500e-03 : f32
    %43 = vector.broadcast %cst_35 : f32 to vector<1x1xf32>
    %44 = arith.mulf %34, %43 : vector<1x1xf32>
    %cst_36 = arith.constant 7.812500e-03 : f32
    %45 = vector.broadcast %cst_36 : f32 to vector<1x1xf32>
    %46 = arith.mulf %37, %45 : vector<1x1xf32>
    %47 = arith.mulf %42, %42 : vector<1x1xf32>
    %48 = arith.subf %46, %47 : vector<1x1xf32>
    %cst_37 = arith.constant 7.812500e-03 : f32
    %49 = vector.broadcast %cst_37 : f32 to vector<1x1xf32>
    %50 = arith.mulf %40, %49 : vector<1x1xf32>
    %51 = arith.mulf %44, %44 : vector<1x1xf32>
    %52 = arith.subf %50, %51 : vector<1x1xf32>
    %cst_38 = arith.constant 9.99999974E-6 : f32
    %53 = vector.broadcast %cst_38 : f32 to vector<1x1xf32>
    %54 = arith.addf %48, %53 : vector<1x1xf32>
    %55 = math.rsqrt %54 : vector<1x1xf32>
    %cst_39 = arith.constant 9.99999974E-6 : f32
    %56 = vector.broadcast %cst_39 : f32 to vector<1x1xf32>
    %57 = arith.addf %52, %56 : vector<1x1xf32>
    %58 = math.rsqrt %57 : vector<1x1xf32>
    %59 = vector.broadcast %42 : vector<1x1xf32> to vector<1x64xf32>
    %60 = arith.mulf %59, %20 : vector<1x64xf32>
    %61 = vector.broadcast %44 : vector<1x1xf32> to vector<1x64xf32>
    %62 = arith.mulf %61, %21 : vector<1x64xf32>
    %63 = arith.addf %60, %62 : vector<1x64xf32>
    %64 = vector.broadcast %55 : vector<1x1xf32> to vector<1x64xf32>
    %65 = arith.mulf %64, %20 : vector<1x64xf32>
    %66 = vector.broadcast %58 : vector<1x1xf32> to vector<1x64xf32>
    %67 = arith.mulf %66, %21 : vector<1x64xf32>
    %68 = arith.addf %65, %67 : vector<1x64xf32>
    %69 = arith.mulf %68, %18 : vector<1x64xf32>
    %70 = arith.mulf %63, %69 : vector<1x64xf32>
    %71 = arith.subf %19, %70 : vector<1x64xf32>
    %72 = vector.broadcast %69 : vector<1x64xf32> to vector<4x64xf32>
    %73 = arith.mulf %23, %72 : vector<4x64xf32>
    %74 = vector.broadcast %71 : vector<1x64xf32> to vector<4x64xf32>
    %75 = arith.addf %73, %74 : vector<4x64xf32>
    %cst_40 = arith.constant 0.000000e+00 : f32
    %76 = vector.broadcast %cst_40 : f32 to vector<4x64xf32>
    %77 = arith.cmpf ogt, %75, %76 : vector<4x64xf32>
    %cst_41 = arith.constant 2.000000e-01 : f32
    %78 = vector.broadcast %cst_41 : f32 to vector<4x64xf32>
    %79 = arith.mulf %78, %75 : vector<4x64xf32>
    %80 = arith.select %77, %75, %79 : vector<4x64xi1>, vector<4x64xf32>
    %c0_42 = arith.constant 0 : index
    %c0_43 = arith.constant 0 : index
    %c0_44 = arith.constant 0 : index
    %81 = vector.load %arg4[%c0_42, %c0_43, %c0_44] : memref<1x4x64xf32, #tpu.memory_space<vmem>>, vector<1x4x64xf32>
    %82 = vector.shape_cast %81 : vector<1x4x64xf32> to vector<4x64xf32>
    %83 = vector.shape_cast %80 : vector<4x64xf32> to vector<1x4x64xf32>
    tpu.vector_store %arg4[%c0_42, %c0_43, %c0_44], %83 {strides = array<i32>} : memref<1x4x64xf32, #tpu.memory_space<vmem>>, vector<1x4x64xf32>,
    return
  }
  func.func @transform_0(%arg0: i32) -> (i32, i32, i32, i32) {
    %c0_i32 = arith.constant 0 : i32
    %c0_i32_0 = arith.constant 0 : i32
    %c0_i32_1 = arith.constant 0 : i32
    %c0_i32_2 = arith.constant 0 : i32
    return %arg0, %c0_i32, %c0_i32_0, %c0_i32_1 : i32, i32, i32, i32
  }
  func.func @transform_1(%arg0: i32) -> (i32, i32, i32) {
    %c0_i32 = arith.constant 0 : i32
    %c0_i32_0 = arith.constant 0 : i32
    %c0_i32_1 = arith.constant 0 : i32
    %c0_i32_2 = arith.constant 0 : i32
    return %c0_i32, %c0_i32_0, %c0_i32_1 : i32, i32, i32
  }
  func.func @transform_2(%arg0: i32) -> (i32, i32) {
    %c0_i32 = arith.constant 0 : i32
    %c0_i32_0 = arith.constant 0 : i32
    %c0_i32_1 = arith.constant 0 : i32
    return %c0_i32, %c0_i32_0 : i32, i32
  }
  func.func @transform_3(%arg0: i32) -> (i32, i32, i32) {
    %c0_i32 = arith.constant 0 : i32
    %c0_i32_0 = arith.constant 0 : i32
    %c0_i32_1 = arith.constant 0 : i32
    return %arg0, %c0_i32, %c0_i32_0 : i32, i32, i32
  }
}

</mosaic_0001>

<bundles_post_ra>
// kernel: tile.24
= control target key start
LH: loop header
LB: loop body
LE: loop exit
PB: predicated region body
PF: predicated region fallthrough
CT: control target
= control target key end

     0   :  { %s77_s6 = smov 3  ;;  %s45_s9 = smov 3  ;;  %vm26_vm0 = vcmask 1043458   ;;  %vm31_vm1 = vcmask 1045508   ;;  %vm36_vm2 = vcmask 1047558   ;;  %vm4_vm3 = vcmask 1047556   ;;  %s545_s0 = inlined_call_operand.vmem [shape: f32[5,16,16], index: 0, kind: input, shape index: {}]   ;;  %s546_s1 = inlined_call_operand.vmem [shape: f32[5,256], index: 1, kind: output, shape index: {}]  }
   0x1   :  { %v261_v0 = vld [vmem:[%s545_s0 + $0x3e] ss:$16 sm:%s77_s6]   ;;  %s305_s10 = smov 96   ;;  %v254_v1 = vld [vmem:[%s545_s0 + $0x3f] ss:$16 sm:%s45_s9]   ;;  %s53_s13 = smov 3 }
   0x2   :  { %79 = vrot.lane.b32.xlu1 %v261_v0, %s305_s10  ;;  %s56_s14 = smov 12  ;;  %s306_s15 = smov 112   ;;  %v256_v2 = vld [vmem:[%s545_s0 + $0x6] ss:$16 sm:%s53_s13]   ;;  %vm6_vm4 = vcmask 130048   ;;  %vm40_vm5 = vcmask 1048448  }
   0x3   :  { %47 = vrot.lane.b32.xlu0 %v254_v1, %s306_s15  ;;  %s61_s18 = smov 48  ;;  %s66_s19 = smov 192  ;;  %v257_v3 = vld [vmem:[%s545_s0 + $0x6] ss:$16 sm:%s56_s14]   ;;  %vm72_vm6 = vcmask 917248   ;;  %vm104_vm7 = vcmask 786048  }
   0x4   :  { %v258_v4 = vld [vmem:[%s545_s0 + $0x126] ss:$-56 sm:%s61_s18]   ;;  %s21_s24 = smov 3  ;;  %s24_s25 = smov 12  ;;  %v59_v5 = vsel %vm26_vm0, %v257_v3, %v256_v2  ;;  %vm136_vm8 = vcmask 654848   ;;  %vm168_vm9 = vcmask 523648  }
   0x5   :  { %v259_v6 = vld [vmem:[%s545_s0 - $0x42] ss:$16 sm:%s66_s19]   ;;  %v249_v7 = vld [vmem:[%s545_s0 + $0x7] ss:$16 sm:%s21_s24]   ;;  %s29_s30 = smov 48  ;;  %s34_s2 = smov 192  ;;  %v64_v8 = vsel %vm31_vm1, %v258_v4, %v59_v5 }
   0x6   :  { %v250_v9 = vld [vmem:[%s545_s0 + $0x7] ss:$16 sm:%s24_s25]   ;;  %s109_s7 = smov 3  ;;  %v69_v11 = vsel %vm36_vm2, %v259_v6, %v64_v8  ;;  %v252_v13 = vld [vmem:[%s545_s0 - $0x41] ss:$16 sm:%s34_s2]   ;;  %s85_s13 = smov 3 }
   0x7   :  { %v251_v10 = vld [vmem:[%s545_s0 + $0x127] ss:$-56 sm:%s29_s30]   ;;  %v27_v12 = vsel %vm26_vm0, %v250_v9, %v249_v7  ;;  %v268_v14 = vld [vmem:[%s545_s0 + $0x3d] ss:$16 sm:%s109_s7]   ;;  %s88_s14 = smov 12  ;;  %s93_s17 = smov 48 }
   0x8   :  { %70 = vrot.lane.b32.xlu1 %v69_v11, %s305_s10  ;;  %v32_v15 = vsel %vm31_vm1, %v251_v10, %v27_v12  ;;  %v263_v16 = vld [vmem:[%s545_s0 + $0x5] ss:$16 sm:%s85_s13]   ;;  %s98_s18 = smov 192  ;;  %s141_s23 = smov 3  ;;  %vm200_vm10 = vcmask 392448   ;;  %vm232_vm11 = vcmask 261248  }
   0x9   :  { %v37_v17 = vsel %vm36_vm2, %v252_v13, %v32_v15  ;;  %v264_v18 = vld [vmem:[%s545_s0 + $0x5] ss:$16 sm:%s88_s14]   ;;  %v266_v21 = vld [vmem:[%s545_s0 - $0x43] ss:$16 sm:%s98_s18]   ;;  %s117_s25 = smov 3  ;;  %s120_s26 = smov 12 }
   0xa   :  { %v265_v19 = vld [vmem:[%s545_s0 + $0x125] ss:$-56 sm:%s93_s17]   ;;  %38 = vrot.lane.b32.xlu0 %v37_v17, %s306_s15  ;;  %v91_v20 = vsel %vm26_vm0, %v264_v18, %v263_v16  ;;  %s125_s2 = smov 48  ;;  %s130_s3 = smov 192 }
   0xb   :  { %v96_v22 = vsel %vm31_vm1, %v265_v19, %v91_v20  ;;  %v275_v23 = vld [vmem:[%s545_s0 + $0x3c] ss:$16 sm:%s141_s23]   ;;  %v270_v24 = vld [vmem:[%s545_s0 + $0x4] ss:$16 sm:%s117_s25]   ;;  %s307_s4 = smov 80   ;;  %s173_s7 = smov 3 }
   0xc   :  { %111 = vrot.lane.b32.xlu1 %v268_v14, %s307_s4  ;;  %v101_v25 = vsel %vm36_vm2, %v266_v21, %v96_v22  ;;  %v271_v26 = vld [vmem:[%s545_s0 + $0x4] ss:$16 sm:%s120_s26]   ;;  %s149_s13 = smov 3  ;;  %s152_s14 = smov 12 }
   0xd   :  { %v123_v27 = vsel %vm26_vm0, %v271_v26, %v270_v24  ;;  %v272_v28 = vld [vmem:[%s545_s0 + $0x124] ss:$-56 sm:%s125_s2]   ;;  %s157_s10 = smov 48  ;;  %s162_s16 = smov 192  ;;  %v277_v32 = vld [vmem:[%s545_s0 + $0x3] ss:$16 sm:%s149_s13]  }
   0xe   :  { %v273_v29 = vld [vmem:[%s545_s0 - $0x44] ss:$16 sm:%s130_s3]   ;;  %102 = vrot.lane.b32.xlu0 %v101_v25, %s307_s4  ;;  %v128_v30 = vsel %vm31_vm1, %v272_v28, %v123_v27  ;;  %s308_s21 = smov 64   ;;  %s181_s15 = smov 3 }
   0xf   :  { %v133_v31 = vsel %vm36_vm2, %v273_v29, %v128_v30  ;;  %v278_v33 = vld [vmem:[%s545_s0 + $0x3] ss:$16 sm:%s152_s14]   ;;  %s184_s24 = smov 12  ;;  %v282_v36 = vld [vmem:[%s545_s0 + $0x3b] ss:$16 sm:%s173_s7]   ;;  %s189_s29 = smov 48 }
  0x10   :  { %143 = vrot.lane.b32.xlu1 %v275_v23, %s308_s21  ;;  %v155_v34 = vsel %vm26_vm0, %v278_v33, %v277_v32  ;;  %v279_v35 = vld [vmem:[%s545_s0 + $0x123] ss:$-56 sm:%s157_s10]   ;;  %s194_s30 = smov 192  ;;  %s205_s2 = smov 3 }
  0x11   :  { %v160_v37 = vsel %vm31_vm1, %v279_v35, %v155_v34  ;;  %v280_v38 = vld [vmem:[%s545_s0 - $0x45] ss:$16 sm:%s162_s16]   ;;  %v284_v39 = vld [vmem:[%s545_s0 + $0x2] ss:$16 sm:%s181_s15]   ;;  %s213_s9 = smov 3  ;;  %s216_s11 = smov 12 }
  0x12   :  { %134 = vrot.lane.b32.xlu0 %v133_v31, %s308_s21  ;;  %v165_v40 = vsel %vm36_vm2, %v280_v38, %v160_v37  ;;  %v285_v41 = vld [vmem:[%s545_s0 + $0x2] ss:$16 sm:%s184_s24]   ;;  %s309_s12 = smov 48   ;;  %s221_s10 = smov 48 }
  0x13   :  { %v286_v42 = vld [vmem:[%s545_s0 + $0x122] ss:$-56 sm:%s189_s29]   ;;  %v187_v43 = vsel %vm26_vm0, %v285_v41, %v284_v39  ;;  %s226_s16 = smov 192  ;;  %v291_v47 = vld [vmem:[%s545_s0 + $0x1] ss:$16 sm:%s213_s9]   ;;  %s15_s21 = smov 3 }
  0x14   :  { %175 = vrot.lane.b32.xlu1 %v282_v36, %s309_s12  ;;  %v287_v44 = vld [vmem:[%s545_s0 - $0x46] ss:$16 sm:%s194_s30]   ;;  %v192_v46 = vsel %vm31_vm1, %v286_v42, %v187_v43  ;;  %s237_s22 = smov 3  ;;  %v2_v49 = vld [vmem:[%s545_s0] ss:$8 sm:$0xf]  }
  0x15   :  { %v289_v45 = vld [vmem:[%s545_s0 + $0x3a] ss:$16 sm:%s205_s2]   ;;  %v292_v48 = vld [vmem:[%s545_s0 + $0x1] ss:$16 sm:%s216_s11]   ;;  %v197_v50 = vsel %vm36_vm2, %v287_v44, %v192_v46  ;;  %s310_s30 = smov 32   ;;  %s311_s18 = smov 16  }
  0x16   :  { %166 = vrot.lane.b32.xlu0 %v165_v40, %s309_s12  ;;  %v219_v51 = vsel %vm26_vm0, %v292_v48, %v291_v47  ;;  %v293_v52 = vld [vmem:[%s545_s0 + $0x121] ss:$-56 sm:%s221_s10]   ;;  %v3_v55 = vld [vmem:[%s545_s0] ss:$8 sm:$0xf0]  }
  0x17   :  { %v294_v53 = vld [vmem:[%s545_s0 - $0x47] ss:$16 sm:%s226_s16]   ;;  %v224_v54 = vsel %vm31_vm1, %v293_v52, %v219_v51  ;;  %v247_v56 = vld [vmem:[%s545_s0 + $0x40] ss:$8 sm:%s15_s21]   ;;  %v5_v58 = vsel %vm4_vm3, %v3_v55, %v2_v49 }
  0x18   :  { %207 = vrot.lane.b32.xlu1 %v289_v45, %s310_s30  ;;  %v296_v57 = vld [vmem:[%s545_s0 + $0x39] ss:$16 sm:%s237_s22]   ;;  %248 = vst.msk [vmem:[%s546_s1 + $0x4] ss:$8 sm:$0x3] %vm6_vm4, %v247_v56   ;;  %v229_v59 = vsel %vm36_vm2, %v294_v53, %v224_v54 }
  0x19   :  { %246 = vst.msk [vmem:[%s546_s1 - $0x2d] ss:$8 sm:$0xc0] %vm6_vm4, %v5_v58   ;;  %7 = vst.msk [vmem:[%s546_s1] ss:$8 sm:$0x3] %vm6_vm4, %v5_v58  }
  0x1a   :  { %198 = vrot.lane.b32.xlu0 %v197_v50, %s310_s30  ;;  %244 = vst.msk [vmem:[%s546_s1 - $0xf] ss:$8 sm:$0xc] %vm6_vm4, %v5_v58   ;;  %245 = vst.msk [vmem:[%s546_s1 - $0x1e] ss:$8 sm:$0x30] %vm6_vm4, %v5_v58  }
  0x1c   :  { %239 = vrot.lane.b32.xlu1 %v296_v57, %s311_s18 }
  0x1e   :  { %230 = vrot.lane.b32.xlu0 %v229_v59, %s311_s18 }
  0x74   :  { %v80_v60 = vpop.permute.xlu1 %79  }
  0x75   :  { %v48_v61 = vpop.permute.xlu0 %47  }
  0x76   :  { %255 = vst.msk [vmem:[%s546_s1 + $0xb] sm:$0x3] %vm40_vm5, %v48_v61  }
  0x77   :  { %262 = vst.msk [vmem:[%s546_s1 + $0xb] sm:$0x3] %vm72_vm6, %v80_v60  }
  0x7a   :  { %v71_v62 = vpop.permute.xlu1 %70  }
  0x7c   :  { %v39_v63 = vpop.permute.xlu0 %38  }
  0x7d   :  { %41 = vst.msk [vmem:[%s546_s1] sm:$0x1f] %vm40_vm5, %v39_v63   ;;  %253 = vst.msk [vmem:[%s546_s1 + $0x3] sm:$0xe0] %vm40_vm5, %v39_v63  }
  0x7e   :  { %v112_v0 = vpop.permute.xlu1 %111   ;;  %73 = vst.msk [vmem:[%s546_s1] sm:$0x1f] %vm72_vm6, %v71_v62   ;;  %260 = vst.msk [vmem:[%s546_s1 + $0x3] sm:$0xe0] %vm72_vm6, %v71_v62  }
  0x7f   :  { %269 = vst.msk [vmem:[%s546_s1 + $0xb] sm:$0x3] %vm104_vm7, %v112_v0  }
  0x80   :  { %v103_v1 = vpop.permute.xlu0 %102  }
  0x81   :  { %105 = vst.msk [vmem:[%s546_s1] sm:$0x1f] %vm104_vm7, %v103_v1   ;;  %267 = vst.msk [vmem:[%s546_s1 + $0x3] sm:$0xe0] %vm104_vm7, %v103_v1  }
  0x82   :  { %v144_v2 = vpop.permute.xlu1 %143  }
  0x83   :  { %276 = vst.msk [vmem:[%s546_s1 + $0xb] sm:$0x3] %vm136_vm8, %v144_v2  }
  0x84   :  { %v135_v3 = vpop.permute.xlu0 %134  }
  0x85   :  { %137 = vst.msk [vmem:[%s546_s1] sm:$0x1f] %vm136_vm8, %v135_v3   ;;  %274 = vst.msk [vmem:[%s546_s1 + $0x3] sm:$0xe0] %vm136_vm8, %v135_v3  }
  0x86   :  { %v176_v4 = vpop.permute.xlu1 %175  }
  0x87   :  { %283 = vst.msk [vmem:[%s546_s1 + $0xb] sm:$0x3] %vm168_vm9, %v176_v4  }
  0x88   :  { %v167_v5 = vpop.permute.xlu0 %166  }
  0x89   :  { %169 = vst.msk [vmem:[%s546_s1] sm:$0x1f] %vm168_vm9, %v167_v5   ;;  %281 = vst.msk [vmem:[%s546_s1 + $0x3] sm:$0xe0] %vm168_vm9, %v167_v5  }
  0x8a   :  { %v208_v6 = vpop.permute.xlu1 %207  }
  0x8b   :  { %290 = vst.msk [vmem:[%s546_s1 + $0xb] sm:$0x3] %vm200_vm10, %v208_v6  }
  0x8c   :  { %v199_v7 = vpop.permute.xlu0 %198  }
  0x8d   :  { %201 = vst.msk [vmem:[%s546_s1] sm:$0x1f] %vm200_vm10, %v199_v7   ;;  %288 = vst.msk [vmem:[%s546_s1 + $0x3] sm:$0xe0] %vm200_vm10, %v199_v7  }
  0x8e   :  { %v240_v8 = vpop.permute.xlu1 %239  }
  0x8f   :  { %297 = vst.msk [vmem:[%s546_s1 + $0xb] sm:$0x3] %vm232_vm11, %v240_v8  }
  0x90   :  { %v231_v9 = vpop.permute.xlu0 %230  }
  0x91   :  { %233 = vst.msk [vmem:[%s546_s1] sm:$0x1f] %vm232_vm11, %v231_v9   ;;  %295 = vst.msk [vmem:[%s546_s1 + $0x3] sm:$0xe0] %vm232_vm11, %v231_v9  }

// kernel: _lambda_.4
= control target key start
LH: loop header
LB: loop body
LE: loop exit
PB: predicated region body
PF: predicated region fallthrough
CT: control target
= control target key end

     0   :  { %s962_s12 = smov 0   ;;  %s1168_s0 = inlined_call_operand.vmem [shape: bf16[2,1,18,72], index: 0, kind: input, shape index: {}]   ;;  %s1169_s1 = inlined_call_operand.vmem [shape: bf16[3,72,256], index: 1, kind: input, shape index: {}]   ;;  %s1170_s2 = inlined_call_operand.vmem [shape: f32[5,256], index: 2, kind: input, shape index: {}]   ;;  %s1171_s3 = inlined_call_operand.vmem [shape: f32[2,16,256], index: 3, kind: output, shape index: {}]  }
   0x1 LB: > { %s792_s13 = sadd.s32 4294967295, %s938_s12   ;;  %p796_p0 = scmp.ge.s32.totalorder %s938_s12, 1  ;;  %s938_s12 = sphi %s962_s12, %s13_s12  }
   0x2   : > { %p137_p1 = scmp.lt.s32.totalorder %s938_s12, 3 }
   0x4   : > { %p138_p2 = pnand %p796_p0, %p137_p1 }
   0x5   : > { %v883_v0 = vld [vmem:[%s1169_s1 + $0x4] ss:$8 sps:$4 sm:$0xff] (!%p138_p2)   ;;  %v885_v1 = vld [vmem:[%s1169_s1] ss:$8 sps:$4 sm:$0xff] (!%p138_p2)   ;;  %v940_v2 = vmov (!%p138_p2), 0   ;;  %p161_p3 = scmp.lt.s32.totalorder (!%p138_p2), %s792_s13, 1  ;;  %v539_v55 = vlaneseq (!%p138_p2) }
   0x6   : > { %141 = sbr.rel (%p138_p2) target bundleno = 476 (0x1dc), region = 32  ;;  %399 = vmatprep.mubr.bf16.mxu0 (!%p138_p2), %v940_v2  ;;  %303 = vmatprep.mubr.bf16.mxu1 (!%p138_p2), %v940_v2  ;;  %v886_v3 = vld [vmem:[%s1169_s1 + $0x14] ss:$8 sps:$4 sm:$0xff] (!%p138_p2)   ;;  %v888_v4 = vld [vmem:[%s1169_s1 + $0x10] ss:$8 sps:$4 sm:$0xff] (!%p138_p2)   ;;  %v182_v10 = vld [vmem:[%s1169_s1 + $0x40] sm:$0xff] (!%p138_p2) }
   0x7   : > { %367 = vmatprep.subr.bf16.mxu0 (!%p138_p2), %v883_v0  ;;  %v889_v5 = vld [vmem:[%s1169_s1 + $0x24] ss:$8 sps:$4 sm:$0xff] (!%p138_p2)   ;;  %v891_v6 = vld [vmem:[%s1169_s1 + $0x20] ss:$8 sps:$4 sm:$0xff] (!%p138_p2)   ;;  %v892_v9 = vld [vmem:[%s1169_s1 + $0x34] ss:$8 sps:$4 sm:$0xff] (!%p138_p2)   ;;  %v832_v17 = vcombine.high (!%p138_p2), %v182_v10, %v182_v10  ;;  %v831_v18 = vcombine.low (!%p138_p2), %v182_v10, %v182_v10 }
   0x8   : > { %368 = vmatpush1.bf16.msra.mxu0 (!%p138_p2), %v885_v1  ;;  %v896_v7 = vld [vmem:[%s1169_s1 + $0x4c] ss:$8 sps:$4 sm:$0xff] (!%p138_p2)   ;;  %v899_v8 = vld [vmem:[%s1169_s1 + $0x48] ss:$8 sps:$4 sm:$0xff] (!%p138_p2)   ;;  %v903_v11 = vld [vmem:[%s1169_s1 + $0x5c] ss:$8 sps:$4 sm:$0xff] (!%p138_p2)  }
   0x9   : > { %369 = vmatprep.subr.bf16.mxu0 (!%p138_p2), %v886_v3  ;;  %271 = vmatprep.subr.bf16.mxu1 (!%p138_p2), %v896_v7  ;;  %v907_v14 = vld [vmem:[%s1169_s1 + $0x58] ss:$8 sps:$4 sm:$0xff] (!%p138_p2)   ;;  %v911_v19 = vld [vmem:[%s1169_s1 + $0x6c] ss:$8 sps:$4 sm:$0xff] (!%p138_p2)   ;;  %vm264_vm0 = vcmask (!%p138_p2), 1043456   ;;  %vm260_vm1 = vcmask (!%p138_p2), 588800  }
   0xa   : > { %272 = vmatpush1.bf16.msra.mxu1 (!%p138_p2), %v899_v8  ;;  %v894_v15 = vld [vmem:[%s1169_s1 + $0x30] ss:$8 sps:$4 sm:$0xff] (!%p138_p2)   ;;  %v917_v22 = vld [vmem:[%s1169_s1 + $0x7c] ss:$8 sps:$4 sm:$0xff] (!%p138_p2)   ;;  %v362_v23 = vsel (!%p138_p2), %vm264_vm0, %v831_v18, 0  ;;  %v808_v26 = vld [vmem:[%s1169_s1 + $0x88] sm:$0xff] (!%p138_p2) }
   0xb   : > { %273 = vmatprep.subr.bf16.mxu1 (!%p138_p2), %v903_v11  ;;  %v913_v20 = vld [vmem:[%s1169_s1 + $0x68] ss:$8 sps:$4 sm:$0xff] (!%p138_p2)   ;;  %v902_v24 = vld [vmem:[%s1169_s1 + $0x94] ss:$8 sps:$4 sm:$0xff] (!%p138_p2)   ;;  %v919_v25 = vld [vmem:[%s1169_s1 + $0x78] ss:$8 sps:$4 sm:$0xff] (!%p138_p2)   ;;  %v820_v29 = vcombine.high (!%p138_p2), %v808_v26, %v808_v26  ;;  %v819_v30 = vcombine.low (!%p138_p2), %v808_v26, %v808_v26 }
   0xc   : > { %370 = vmatpush1.bf16.msra.mxu0 (!%p138_p2), %v888_v4  ;;  %v900_v32 = vld [vmem:[%s1169_s1 + $0x90] ss:$8 sps:$4 sm:$0xff] (!%p138_p2)   ;;  %v910_v33 = vld [vmem:[%s1169_s1 + $0xa4] ss:$8 sps:$4 sm:$0xff] (!%p138_p2)   ;;  %vm202_vm2 = vsmask.f32 (!%p138_p2), 7424 }
   0xd   : > { %s1173_s13 = smov (!%p161_p3, %s792_s13), 1  ;;  %371 = vmatprep.subr.bf16.mxu0 %v889_v5  ;;  %v266_v36 = vsel %vm264_vm0, %v819_v30, 0  ;;  %v908_v38 = vld [vmem:[%s1169_s1 + $0xa0] ss:$8 sps:$4 sm:$0xff]   ;;  %v916_v39 = vld [vmem:[%s1169_s1 + $0xb4] ss:$8 sps:$4 sm:$0xff]  }
   0xe   : > { %s872_s26 = smul.u32 12, %s1173_s13  ;;  %274 = vmatpush1.bf16.msra.mxu1 %v907_v14  ;;  %v914_v41 = vld [vmem:[%s1169_s1 + $0xb0] ss:$8 sps:$4 sm:$0xff]   ;;  %v922_v43 = vld [vmem:[%s1169_s1 + $0xc4] ss:$8 sps:$4 sm:$0xff]   ;;  %vm424_vm3 = vcmask 1046528  }
   0xf   : > { %275 = vmatprep.subr.bf16.mxu1 %v911_v19  ;;  %v843_v44 = vld [vmem:[%s1169_s1 + $0xd0] sm:$0xff]  ;;  %v920_v46 = vld [vmem:[%s1169_s1 + $0xc0] ss:$8 sps:$4 sm:$0xff]   ;;  %v1075_v58 = vshrl.u32 %v539_v55, 7  ;;  %vm598_vm4 = vcmask 1040384   ;;  %s863_s5 = sshll.u32 %s1173_s13, 5 }
  0x10   : > { %s1005_s8 = scalar_lea.vmem %s1168_s0, %s872_s26  ;;  %372 = vmatpush1.bf16.msra.mxu0 %v891_v6  ;;  %v854_v47 = vcombine.high %v843_v44, %v843_v44  ;;  %v853_v48 = vcombine.low %v843_v44, %v843_v44  ;;  %v529_v60 = vld [vmem:[%s1170_s2] ss:$8 sm:$0x3]  ;;  %v859_v26 = vld [vmem:[%s1170_s2 + $0x3] ss:$8 sm:$0x3]  ;;  %s170_s9 = scalar_lea.vmem %s1171_s3, %s863_s5 }
  0x11   : > { %v172_v12 = vld [vmem:[%s1005_s8] sm:$0xf]  ;;  %v173_v13 = vld [vmem:[%s1005_s8 + $0x4] sm:$0xf]  ;;  %373 = vmatprep.subr.bf16.mxu0 %v892_v9  ;;  %v1078_v59 = vsub.s32 0, %v1075_v58  ;;  %v1084_v61 = vsub.s32 1, %v1075_v58 }
  0x12   : > { %v809_v16 = vcombine.low %v172_v12, %v173_v13  ;;  %276 = vmatpush1.bf16.msra.mxu1 %v913_v20  ;;  %v926_v31 = vld [vmem:[%s1005_s8 + $0x8] ss:$0 sps:$4 sm:$0x11]   ;;  %v410_v42 = vld [vmem:[%s1005_s8] sm:$0xe]  ;;  %v477_v51 = vsel %vm264_vm0, %v853_v48, 0 }
  0x13   : > { %277 = vmatprep.subr.bf16.mxu1 %v917_v22  ;;  %v211_v34 = vshll.u32 %v926_v31, 16  ;;  %v844_v45 = vcombine.low %v410_v42, %v173_v13  ;;  %v426_v50 = vrot.slane %v926_v31, 1  ;;  %v542_v62 = vrot.slane %v529_v60, %v1078_v59  ;;  %v860_v31 = vld [vmem:[%s1170_s2 + $0x4] ss:$8 sm:$0x3] }
  0x14   : > { %v206_v21 = vshll.u32 %v809_v16, 16  ;;  %374 = vmatpush1.bf16.msra.mxu0 %v894_v15  ;;  %v204_v27 = vshrl.u32 %v809_v16, 16  ;;  %v546_v0 = vrot.slane %v529_v60, %v1084_v61 }
  0x15   : > { %833 = vmatprep.subr.msk.bf16.mxu0 %vm264_vm0, %v832_v17  ;;  %v213_v37 = vrot.slane %v211_v34, 1  ;;  %v425_v49 = vrot.slane %v844_v45, 1 }
  0x16   : > { %v208_v28 = vrot.slane %v206_v21, 1  ;;  %278 = vmatpush1.bf16.msra.mxu1 %v919_v25 }
  0x17   : > { %821 = vmatprep.subr.msk.bf16.mxu1 %vm264_vm0, %v820_v29  ;;  %v427_v52 = vsel %vm424_vm3, %v425_v49, %v426_v50 }
  0x18   : > { %376 = vmatpush1.bf16.msra.mxu0 %v362_v23  ;;  %v209_v35 = vor.u32 %v208_v28, %v204_v27 }
  0x19   : > { %482 = vmatprep.subr.bf16.mxu0 %v902_v24 }
  0x1a   : > { %280 = vmatpush1.bf16.msra.mxu1 %v266_v36  ;;  %v214_v40 = vsel %vm202_vm2, %v209_v35, %v213_v37  ;;  %v1115_v37 = vrot.slane %v859_v26, %v1078_v59 }
  0x1b   : > { %834 = vmatmul.mubr.msk.bf16.vlgmr.msra.gmra.mrb[0].mxu0 %vm260_vm1, %v809_v16 }
  0x1c   : > { %483 = vmatpush1.bf16.msra.mxu0 %v900_v32  ;;  %514 = vmatprep.mubr.bf16.mxu0 %v940_v2 }
  0x1d   : > { %484 = vmatprep.subr.bf16.mxu0 %v910_v33  ;;  %822 = vmatmul.mubr.msk.bf16.vlgmr.msra.gmra.mrb[0].mxu1 %vm260_vm1, %v214_v40 }
  0x20   : > { %485 = vmatpush1.bf16.msra.mxu0 %v908_v38 }
  0x21   : > { %486 = vmatprep.subr.bf16.mxu0 %v916_v39  ;;  %v1118_v39 = vrot.slane %v860_v31, %v1078_v59 }
  0x24   : > { %487 = vmatpush1.bf16.msra.mxu0 %v914_v41  ;;  %v1121_v41 = vrot.slane %v859_v26, %v1084_v61 }
  0x25   : > { %488 = vmatprep.subr.bf16.mxu0 %v922_v43  ;;  %v612_v43 = vrot.slane %v860_v31, %v1084_v61 }
  0x28   : > { %489 = vmatpush1.bf16.msra.mxu0 %v920_v46 }
  0x29   : > { %855 = vmatprep.subr.msk.bf16.mxu0 %vm264_vm0, %v854_v47 }
  0x2c   : > { %491 = vmatpush1.bf16.msra.mxu0 %v477_v51 }
  0x2f   : > { %856 = vmatmul.mubr.msk.bf16.vlgmr.msra.gmra.mrb[0].mxu0 %vm260_vm1, %v427_v52 }
  0xf0   : > { %v305_v53 = vpop.f32.mrb[0].mxu1 }
  0xf1   : > { %v307_v54 = vpop.f32.mrb[1].mxu1 }
  0xf2   : > { %v309_v56 = vpop.f32.mrb[2].mxu1 }
  0xf3   : > { %v311_v57 = vpop.f32.mrb[3].mxu1 }
 0x102   : > { %v516_v63 = vpop.f32.mrb[0].mxu0 }
 0x103   : > { %v864_v1 = vadd.f32 %v516_v63, %v305_v53  ;;  %v518_v2 = vpop.f32.mrb[1].mxu0 }
 0x104   : > { %v865_v3 = vadd.f32 %v518_v2, %v307_v54  ;;  %v520_v4 = vpop.f32.mrb[2].mxu0 }
 0x105   : > { %v1088_v5 = vadd.f32 %v864_v1, %v542_v62  ;;  %v866_v6 = vadd.f32 %v520_v4, %v309_v56  ;;  %v522_v7 = vpop.f32.mrb[3].mxu0 }
 0x106   : > { %v1090_v8 = vadd.f32 %v865_v3, %v546_v0  ;;  %v867_v9 = vadd.f32 %v522_v7, %v311_v57 }
 0x107   : > { %v1092_v10 = vadd.f32 %v866_v6, %v542_v62  ;;  %v567_v12 = vmul.f32 %v1088_v5, %v1088_v5 }
 0x108   : > { %v1094_v11 = vadd.f32 %v867_v9, %v546_v0  ;;  %v568_v15 = vmul.f32 %v1090_v8, %v1090_v8 }
 0x109   : > { %v553_v13 = vadd.f32 %v1092_v10, %v1088_v5  ;;  %v569_v14 = vmul.f32 %v1092_v10, %v1092_v10 }
 0x10a   : > { %v560_v16 = vadd.f32 %v1094_v11, %v1090_v8  ;;  %v570_v17 = vmul.f32 %v1094_v11, %v1094_v11 }
 0x10b   : > { %v554_v18 = vrot.slane %v553_v13, 4  ;;  %v571_v19 = vadd.f32 %v569_v14, %v567_v12 }
 0x10c   : > { %v561_v20 = vrot.slane %v560_v16, 4  ;;  %v578_v21 = vadd.f32 %v570_v17, %v568_v15 }
 0x10d   : > { %v555_v22 = vadd.f32 %v554_v18, %v553_v13  ;;  %v572_v23 = vrot.slane %v571_v19, 4 }
 0x10e   : > { %v562_v24 = vadd.f32 %v561_v20, %v560_v16  ;;  %v579_v25 = vrot.slane %v578_v21, 4 }
 0x10f   : > { %v556_v27 = vrot.slane %v555_v22, 2  ;;  %v573_v28 = vadd.f32 %v572_v23, %v571_v19 }
 0x110   : > { %v563_v29 = vrot.slane %v562_v24, 2  ;;  %v580_v30 = vadd.f32 %v579_v25, %v578_v21 }
 0x111   : > { %v557_v32 = vadd.f32 %v556_v27, %v555_v22  ;;  %v574_v33 = vrot.slane %v573_v28, 2  ;;  %v857_v27 = vld [vmem:[%s1170_s2 + $0x1] ss:$8 sm:$0x3] }
 0x112   : > { %v564_v34 = vadd.f32 %v563_v29, %v562_v24  ;;  %v581_v35 = vrot.slane %v580_v30, 2  ;;  %v941_v29 = vmov 1966171168  }
 0x113   : > { %v558_v36 = vrot.slane %v557_v32, 1  ;;  %v575_v38 = vadd.f32 %v574_v33, %v573_v28 }
 0x114   : > { %v565_v40 = vrot.slane %v564_v34, 1  ;;  %v582_v42 = vadd.f32 %v581_v35, %v580_v30  ;;  %v679_v30 = vunpack.c.l.s4 %v941_v29  ;;  %v668_v35 = vrot.slane %v857_v27, %v1084_v61 }
 0x115   : > { %v559_v44 = vadd.f32 %v558_v36, %v557_v32  ;;  %v576_v45 = vrot.slane %v575_v38, 1 }
 0x116   : > { %v566_v46 = vadd.f32 %v565_v40, %v564_v34  ;;  %v583_v47 = vrot.slane %v582_v42, 1  ;;  %v664_v34 = vrot.slane %v857_v27, %v1078_v59 }
 0x117   : > { %v596_v48 = vmul.f32 %v1115_v37, %v559_v44  ;;  %v577_v49 = vadd.f32 %v576_v45, %v575_v38  ;;  %v615_v52 = vmul.f32 %v1118_v39, %v559_v44  ;;  %v680_v44 = vunpack.c.0.s8 %v679_v30 }
 0x118   : > { %v597_v50 = vmul.f32 %v1121_v41, %v566_v46  ;;  %v584_v51 = vadd.f32 %v583_v47, %v582_v42  ;;  %v616_v53 = vmul.f32 %v612_v43, %v566_v46 }
 0x119   : > { %v599_v54 = vsel %vm598_vm4, %v596_v48, 0.0  ;;  %v622_v55 = vmul.f32 %v1115_v37, %v577_v49  ;;  %v629_v60 = vmul.f32 %v1118_v39, %v577_v49  ;;  %v617_v2 = vsel %vm598_vm4, %v615_v52, 0.0 }
 0x11a   : > { %v600_v56 = vsel %vm598_vm4, %v597_v50, 0.0  ;;  %v623_v57 = vmul.f32 %v1121_v41, %v584_v51  ;;  %v630_v62 = vmul.f32 %v612_v43, %v584_v51  ;;  %v618_v3 = vsel %vm598_vm4, %v616_v53, 0.0 }
 0x11b   : > { %v601_v63 = vadd.f32 %v600_v56, %v599_v54  ;;  %v624_v0 = vsel %vm598_vm4, %v622_v55, 0.0  ;;  %v631_v6 = vsel %vm598_vm4, %v629_v60, 0.0  ;;  %v619_v9 = vadd.f32 %v618_v3, %v617_v2 }
 0x11c   : > { %v625_v1 = vsel %vm598_vm4, %v623_v57, 0.0  ;;  %v632_v7 = vsel %vm598_vm4, %v630_v62, 0.0  ;;  %v683_v53 = vsub.s32 %v680_v44, %v1075_v58 }
 0x11d   : > { %602 = vadd.xlane.f32.xlu0 %v601_v63  ;;  %v626_v4 = vadd.f32 %v625_v1, %v624_v0  ;;  %v633_v12 = vadd.f32 %v632_v7, %v631_v6 }
 0x11f   : > { %627 = vadd.xlane.f32.xlu1 %v626_v4 }
 0x121   : > { %620 = vadd.xlane.f32.xlu0 %v619_v9 }
 0x123   : > { %634 = vadd.xlane.f32.xlu1 %v633_v12 }
 0x1aa   : > { %v603_v13 = vpop.xlane.xlu0 %602 }
 0x1ab   : > { %v636_v14 = vmul.f32 0.00048828125, %v603_v13 }
 0x1ac   : > { %v628_v15 = vpop.xlane.xlu1 %627 }
 0x1ad   : > { %v638_v16 = vmul.f32 0.00048828125, %v628_v15  ;;  %v639_v17 = vmul.f32 %v636_v14, %v636_v14  ;;  %v648_v45 = vmul.f32 %v636_v14, %v1115_v37  ;;  %v649_v46 = vmul.f32 %v636_v14, %v1121_v41 }
 0x1ae   : > { %v621_v18 = vpop.xlane.xlu0 %620 }
 0x1af   : > { %v640_v19 = vsub.f32 %v638_v16, %v639_v17  ;;  %v637_v20 = vmul.f32 0.00048828125, %v621_v18 }
 0x1b0   : > { %v635_v21 = vpop.xlane.xlu1 %634 }
 0x1b1   : > { %v641_v22 = vmul.f32 0.00048828125, %v635_v21  ;;  %v644_v23 = vadd.f32 1e-05, %v640_v19  ;;  %v642_v24 = vmul.f32 %v637_v20, %v637_v20  ;;  %v650_v32 = vmul.f32 %v637_v20, %v1118_v39 }
 0x1b2   : > { %v651_v33 = vmul.f32 %v637_v20, %v612_v43 }
 0x1b3   : > { %v643_v25 = vsub.f32 %v641_v22, %v642_v24  ;;  %928 = vrsqrt.f32 %v644_v23  ;;  %v652_v49 = vadd.f32 %v650_v32, %v648_v45 }
 0x1b4   : > { %v653_v50 = vadd.f32 %v651_v33, %v649_v46 }
 0x1b5   : > { %v646_v26 = vadd.f32 1e-05, %v643_v25 }
 0x1b7   : > { %930 = vrsqrt.f32 %v646_v26 }
 0x1bd   : > { %v929_v28 = vpop.eup %928 }
 0x1be   : > { %v654_v36 = vmul.f32 %v929_v28, %v1115_v37  ;;  %v655_v38 = vmul.f32 %v929_v28, %v1121_v41 }
 0x1c1   : > { %v931_v31 = vpop.eup %930 }
 0x1c2   : > { %v656_v40 = vmul.f32 %v931_v31, %v1118_v39  ;;  %v657_v42 = vmul.f32 %v931_v31, %v612_v43  ;;  %v858_v39 = vld [vmem:[%s1170_s2 + $0x2] ss:$8 sm:$0x3] }
 0x1c4   : > { %v658_v47 = vadd.f32 %v656_v40, %v654_v36  ;;  %v659_v48 = vadd.f32 %v657_v42, %v655_v38 }
 0x1c6   : > { %v671_v51 = vmul.f32 %v664_v34, %v658_v47  ;;  %v672_v52 = vmul.f32 %v668_v35, %v659_v48 }
 0x1c8   : > { %v673_v54 = vmul.f32 %v671_v51, %v652_v49  ;;  %v674_v55 = vmul.f32 %v672_v52, %v653_v50  ;;  %v697_v37 = vrot.slane %v671_v51, %v1078_v59  ;;  %v701_v41 = vrot.slane %v672_v52, %v1078_v59 }
 0x1ca   : > { %v677_v56 = vcombine.low %v673_v54, %v674_v55  ;;  %v702_v62 = vmul.f32 %v697_v37, %v1088_v5  ;;  %v703_v63 = vmul.f32 %v701_v41, %v1090_v8  ;;  %v704_v58 = vmul.f32 %v697_v37, %v1092_v10 }
 0x1cb   : > { %v705_v0 = vmul.f32 %v701_v41, %v1094_v11 }
 0x1cc   : > { %v684_v57 = vrot.slane %v677_v56, %v683_v53 }
 0x1ce   : > { %v691_v43 = vrot.slane %v684_v57, %v683_v53 }
 0x1d0   : > { %v693_v60 = vsub.f32 %v858_v39, %v691_v43 }
 0x1d2   : > { %v710_v1 = vrot.slane %v693_v60, %v1078_v59  ;;  %v714_v2 = vrot.slane %v693_v60, %v1084_v61 }
 0x1d4   : > { %v717_v3 = vadd.f32 %v710_v1, %v702_v62  ;;  %v718_v4 = vadd.f32 %v714_v2, %v703_v63  ;;  %v719_v6 = vadd.f32 %v710_v1, %v704_v58  ;;  %v720_v7 = vadd.f32 %v714_v2, %v705_v0 }
 0x1d6   : > { %vm721_vm5 = vcmp.gt.f32.partialorder %v717_v3, 0.0  ;;  %vm722_vm6 = vcmp.gt.f32.partialorder %v718_v4, 0.0  ;;  %vm723_vm7 = vcmp.gt.f32.partialorder %v719_v6, 0.0  ;;  %vm724_vm8 = vcmp.gt.f32.partialorder %v720_v7, 0.0 }
 0x1d7   : > { %v725_v5 = vmul.f32 0.2, %v717_v3  ;;  %v726_v8 = vmul.f32 0.2, %v718_v4  ;;  %v727_v10 = vmul.f32 0.2, %v719_v6 }
 0x1d8   : > { %v728_v11 = vmul.f32 0.2, %v720_v7 }
 0x1d9   : > { %v729_v59 = vsel %vm721_vm5, %v717_v3, %v725_v5  ;;  %v730_v9 = vsel %vm722_vm6, %v718_v4, %v726_v8  ;;  %v731_v61 = vsel %vm723_vm7, %v719_v6, %v727_v10 }
 0x1da   : > { %v732_v12 = vsel %vm724_vm8, %v720_v7, %v728_v11  ;;  %733 = vst [vmem:[%s170_s9] sm:$0xff] %v729_v59  ;;  %734 = vst [vmem:[%s170_s9 + $0x8] sm:$0xff] %v730_v9 }
 0x1db   : > { %735 = vst [vmem:[%s170_s9 + $0x10] sm:$0xff] %v731_v61  ;;  %736 = vst [vmem:[%s170_s9 + $0x18] sm:$0xff] %v732_v12 }
 0x1dc PF: > { %s13_s12 = sadd.s32 1, %s938_s12  }
 0x1dd   : > { %p10_p4 = scmp.ge.s32.totalorder %s13_s12, 4  }
 0x1df   :  { %12 = sbr.rel (!%p10_p4) target bundleno = 1 (0x1), region = 68 }

// kernel: tile.29
= control target key start
LH: loop header
LB: loop body
LE: loop exit
PB: predicated region body
PF: predicated region fallthrough
CT: control target
= control target key end

     0   :  { %vm5_vm0 = vcmask 1044484   ;;  %s101_s14 = smov 112   ;;  %s102_s19 = smov 80   ;;  %vm7_vm1 = vcmask 130048   ;;  %vm17_vm2 = vcmask 1048448   ;;  %vm27_vm3 = vcmask 917248   ;;  %s198_s0 = inlined_call_operand.vmem [shape: f32[5,8,16], index: 0, kind: input, shape index: {}]   ;;  %s199_s1 = inlined_call_operand.vmem [shape: f32[5,128], index: 1, kind: output, shape index: {}]  }
   0x1   :  { %v80_v0 = vld [vmem:[%s198_s0 + $0x7] ss:$8 sm:$0xf]   ;;  %v84_v3 = vld [vmem:[%s198_s0 + $0x5] ss:$8 sm:$0xf]  }
   0x2   :  { %v81_v1 = vld [vmem:[%s198_s0 + $0x23] sm:$0x10]   ;;  %v85_v4 = vld [vmem:[%s198_s0 + $0x21] sm:$0x10]   ;;  %v83_v7 = vld [vmem:[%s198_s0 + $0x22] sm:$0x10]  }
   0x3   :  { %v14_v2 = vsel %vm5_vm0, %v81_v1, %v80_v0  ;;  %v34_v5 = vsel %vm5_vm0, %v85_v4, %v84_v3  ;;  %v82_v6 = vld [vmem:[%s198_s0 + $0x6] ss:$8 sm:$0xf]   ;;  %v86_v9 = vld [vmem:[%s198_s0 + $0x4] ss:$8 sm:$0xf]  }
   0x4   :  { %15 = vrot.lane.b32.xlu0 %v14_v2, %s101_s14  ;;  %35 = vrot.lane.b32.xlu1 %v34_v5, %s102_s19  ;;  %v24_v8 = vsel %vm5_vm0, %v83_v7, %v82_v6  ;;  %v87_v10 = vld [vmem:[%s198_s0 + $0x20] sm:$0x10]   ;;  %v88_v12 = vld [vmem:[%s198_s0 + $0x3] ss:$8 sm:$0xf]   ;;  %s103_s3 = smov 96  }
   0x5   :  { %v44_v11 = vsel %vm5_vm0, %v87_v10, %v86_v9  ;;  %v89_v13 = vld [vmem:[%s198_s0 + $0x1f] sm:$0x10]   ;;  %v90_v14 = vld [vmem:[%s198_s0 + $0x2] ss:$8 sm:$0xf]   ;;  %s104_s4 = smov 64  }
   0x6   :  { %v91_v15 = vld [vmem:[%s198_s0 + $0x1e] sm:$0x10]   ;;  %v54_v16 = vsel %vm5_vm0, %v89_v13, %v88_v12  ;;  %v2_v17 = vld [vmem:[%s198_s0] ss:$8 sm:$0xf]   ;;  %s105_s14 = smov 48  }
   0x7   :  { %v79_v18 = vld [vmem:[%s198_s0 + $0x1c] sm:$0x10]   ;;  %v64_v19 = vsel %vm5_vm0, %v91_v15, %v90_v14  ;;  %v92_v20 = vld [vmem:[%s198_s0 + $0x1] ss:$8 sm:$0xf]   ;;  %s106_s15 = smov 32  }
   0x8   :  { %25 = vrot.lane.b32.xlu0 %v24_v8, %s103_s3  ;;  %45 = vrot.lane.b32.xlu1 %v44_v11, %s104_s4  ;;  %v93_v21 = vld [vmem:[%s198_s0 + $0x1d] sm:$0x10]   ;;  %v6_v22 = vsel %vm5_vm0, %v79_v18, %v2_v17  ;;  %s107_s16 = smov 16   ;;  %vm37_vm4 = vcmask 786048   ;;  %vm47_vm5 = vcmask 654848   ;;  %vm57_vm6 = vcmask 523648  }
   0x9   :  { %8 = vst.msk [vmem:[%s199_s1] sm:$0x1f] %vm7_vm1, %v6_v22   ;;  %v74_v23 = vsel %vm5_vm0, %v93_v21, %v92_v20  ;;  %vm67_vm7 = vcmask 392448   ;;  %vm77_vm8 = vcmask 261248  }
   0xc   :  { %55 = vrot.lane.b32.xlu0 %v54_v16, %s105_s14  ;;  %65 = vrot.lane.b32.xlu1 %v64_v19, %s106_s15 }
  0x10   :  { %75 = vrot.lane.b32.xlu0 %v74_v23, %s107_s16 }
  0x76   :  { %v16_v24 = vpop.permute.xlu0 %15   ;;  %v36_v25 = vpop.permute.xlu1 %35  }
  0x77   :  { %18 = vst.msk [vmem:[%s199_s1] sm:$0x1f] %vm17_vm2, %v16_v24  }
  0x7a   :  { %v26_v26 = vpop.permute.xlu0 %25   ;;  %v46_v27 = vpop.permute.xlu1 %45  }
  0x7b   :  { %28 = vst.msk [vmem:[%s199_s1] sm:$0x1f] %vm27_vm3, %v26_v26  }
  0x7c   :  { %38 = vst.msk [vmem:[%s199_s1] sm:$0x1f] %vm37_vm4, %v36_v25  }
  0x7d   :  { %48 = vst.msk [vmem:[%s199_s1] sm:$0x1f] %vm47_vm5, %v46_v27  }
  0x7e   :  { %v56_v28 = vpop.permute.xlu0 %55   ;;  %v66_v29 = vpop.permute.xlu1 %65  }
  0x7f   :  { %58 = vst.msk [vmem:[%s199_s1] sm:$0x1f] %vm57_vm6, %v56_v28  }
  0x80   :  { %68 = vst.msk [vmem:[%s199_s1] sm:$0x1f] %vm67_vm7, %v66_v29  }
  0x82   :  { %v76_v30 = vpop.permute.xlu0 %75  }
  0x83   :  { %78 = vst.msk [vmem:[%s199_s1] sm:$0x1f] %vm77_vm8, %v76_v30  }

// kernel: _lambda_.5
= control target key start
LH: loop header
LB: loop body
LE: loop exit
PB: predicated region body
PF: predicated region fallthrough
CT: control target
= control target key end

     0   :  { %s1405_s12 = smov 0   ;;  %s1626_s0 = inlined_call_operand.vmem [shape: bf16[2,2,9,288], index: 0, kind: input, shape index: {}]   ;;  %s1627_s1 = inlined_call_operand.vmem [shape: bf16[3,288,128], index: 1, kind: input, shape index: {}]   ;;  %s1628_s2 = inlined_call_operand.vmem [shape: f32[5,128], index: 2, kind: input, shape index: {}]   ;;  %s1629_s3 = inlined_call_operand.vmem [shape: f32[2,8,128], index: 3, kind: output, shape index: {}]  }
   0x1 LB: > { %s1048_s13 = sadd.s32 4294967295, %s1381_s12   ;;  %p1052_p0 = scmp.ge.s32.totalorder %s1381_s12, 1  ;;  %s1381_s12 = sphi %s1405_s12, %s13_s12  }
   0x2   : > { %p137_p1 = scmp.lt.s32.totalorder %s1381_s12, 3 }
   0x4   : > { %p138_p2 = pnand %p1052_p0, %p137_p1 }
   0x5   : > { %v1308_v0 = vld [vmem:[%s1627_s1 + $0xd0] sm:$0xff] (!%p138_p2)   ;;  %v1383_v1 = vmov (!%p138_p2), 0.0   ;;  %vm1384_vm0 = vmmov (!%p138_p2), 0   ;;  %p160_p3 = scmp.lt.s32.totalorder (!%p138_p2), %s1048_s13, 1  ;;  %v1311_v4 = vld [vmem:[%s1627_s1 + $0xd8] sm:$0xff] (!%p138_p2)   ;;  %v1314_v7 = vld [vmem:[%s1627_s1 + $0x40] sm:$0xff] (!%p138_p2)  }
   0x6   : > { %141 = sbr.rel (%p138_p2) target bundleno = 490 (0x1ea), region = 32  ;;  %1273 = vmatprep.subr.bf16.mxu1 (!%p138_p2), %v1383_v1  ;;  %v1309_v2 = vld [vmem:[%s1627_s1 + $0x110] sm:$0xff] (!%p138_p2)   ;;  %1198 = vmatprep.subr.bf16.mxu0 (!%p138_p2), %v1308_v0  ;;  %v1312_v5 = vld [vmem:[%s1627_s1 + $0x118] sm:$0xff] (!%p138_p2)   ;;  %v1315_v8 = vld [vmem:[%s1627_s1 + $0xe0] sm:$0xff] (!%p138_p2)   ;;  %vm366_vm1 = vcmask (!%p138_p2), 261120   ;;  %vm944_vm2 = vcmask (!%p138_p2), 1040384  }
   0x7   : > { %v1310_v3 = vld [vmem:[%s1627_s1 + $0x90] sm:$0xff] (!%p138_p2)   ;;  %1277 = vmatprep.mubr.msk.bf16.mxu1 (!%p138_p2), %vm1384_vm0, %v1383_v1  ;;  %1274 = vmatpush3.bf16.msra.mxu1 (!%p138_p2), %v1309_v2  ;;  %v1313_v6 = vld [vmem:[%s1627_s1 + $0x98] sm:$0xff] (!%p138_p2)   ;;  %v1317_v9 = vld [vmem:[%s1627_s1] sm:$0xff] (!%p138_p2)  }
   0x8   : > { %1199 = vmatpush3.bf16.msra.mxu0 (!%p138_p2), %v1310_v3  ;;  %1275 = vmatprep.subr.bf16.mxu1 (!%p138_p2), %v1383_v1  ;;  %v1318_v11 = vld [vmem:[%s1627_s1 + $0xa0] sm:$0xff] (!%p138_p2)   ;;  %v1319_v12 = vld [vmem:[%s1627_s1 + $0x48] sm:$0xff] (!%p138_p2)   ;;  %v1323_v16 = vld [vmem:[%s1627_s1 + $0x50] sm:$0xff] (!%p138_p2)  }
   0x9   : > { %1200 = vmatprep.subr.bf16.mxu0 (!%p138_p2), %v1311_v4  ;;  %v1320_v13 = vld [vmem:[%s1627_s1 + $0xe8] sm:$0xff] (!%p138_p2)   ;;  %v1324_v17 = vld [vmem:[%s1627_s1 + $0xf0] sm:$0xff] (!%p138_p2)   ;;  %v1327_v20 = vld [vmem:[%s1627_s1 + $0x58] sm:$0xff] (!%p138_p2)  }
   0xa   : > { %v1321_v14 = vld [vmem:[%s1627_s1 + $0x8] sm:$0xff] (!%p138_p2)   ;;  %v1325_v18 = vld [vmem:[%s1627_s1 + $0x10] sm:$0xff] (!%p138_p2)   ;;  %v1328_v21 = vld [vmem:[%s1627_s1 + $0xf8] sm:$0xff] (!%p138_p2)  }
   0xb   : > { %1276 = vmatpush3.bf16.msra.mxu1 (!%p138_p2), %v1312_v5  ;;  %v1322_v15 = vld [vmem:[%s1627_s1 + $0xa8] sm:$0xff] (!%p138_p2)   ;;  %v1326_v19 = vld [vmem:[%s1627_s1 + $0xb0] sm:$0xff] (!%p138_p2)   ;;  %v1329_v22 = vld [vmem:[%s1627_s1 + $0x18] sm:$0xff] (!%p138_p2)  }
   0xc   : > { %1201 = vmatpush3.bf16.msra.mxu0 (!%p138_p2), %v1313_v6  ;;  %1223 = vmatprep.subr.bf16.mxu1 (!%p138_p2), %v1314_v7  ;;  %v1330_v23 = vld [vmem:[%s1627_s1 + $0xb8] sm:$0xff] (!%p138_p2)   ;;  %v1331_v24 = vld [vmem:[%s1627_s1 + $0x60] sm:$0xff] (!%p138_p2)   ;;  %v1335_v28 = vld [vmem:[%s1627_s1 + $0x68] sm:$0xff] (!%p138_p2)  }
   0xd   : > { %s1631_s13 = smov (!%p160_p3, %s1048_s13), 1  ;;  %1202 = vmatprep.subr.bf16.mxu0 %v1315_v8  ;;  %v1332_v25 = vld [vmem:[%s1627_s1 + $0x100] sm:$0xff]   ;;  %v1336_v29 = vld [vmem:[%s1627_s1 + $0x108] sm:$0xff]   ;;  %v1341_v35 = vld [vmem:[%s1627_s1 + $0x70] sm:$0xff]  }
   0xe   : > { %s1297_s28 = smul.u32 48, %s1631_s13  ;;  %v1333_v26 = vld [vmem:[%s1627_s1 + $0x20] sm:$0xff]   ;;  %v1337_v30 = vld [vmem:[%s1627_s1 + $0x28] sm:$0xff]   ;;  %v1342_v36 = vld [vmem:[%s1627_s1 + $0x30] sm:$0xff]   ;;  %s1054_s14 = sshll.u32 %s1631_s13, 3 }
   0xf   : > { %v1334_v27 = vld [vmem:[%s1627_s1 + $0xc0] sm:$0xff]   ;;  %v1338_v31 = vld [vmem:[%s1627_s1 + $0xc8] sm:$0xff]   ;;  %v1345_v39 = vld [vmem:[%s1627_s1 + $0x78] sm:$0xff]   ;;  %s168_s17 = scalar_lea.vmem %s1629_s3, %s1054_s14 }
  0x10   : > { %s1447_s6 = scalar_lea.vmem %s1626_s0, %s1297_s28  ;;  %1203 = vmatpush3.bf16.msra.mxu0 %v1318_v11  ;;  %v1343_v37 = vld [vmem:[%s1627_s1 + $0x160] sm:$0xff]   ;;  %v1346_v40 = vld [vmem:[%s1627_s1 + $0x38] sm:$0xff]   ;;  %v1347_v41 = vld [vmem:[%s1627_s1 + $0x168] sm:$0xff]  }
  0x11   : > { %v1316_v10 = vld [vmem:[%s1447_s6 + $0x20] ss:$0 sps:$4 sm:$0xff]   ;;  %1204 = vmatprep.subr.bf16.mxu0 %v1320_v13  ;;  %v1055_v32 = vld [vmem:[%s1447_s6 + $0x18] sm:$0xff]  ;;  %v1348_v42 = vld [vmem:[%s1627_s1 + $0x128] sm:$0xff]  }
  0x12   : > { %1278 = vmatmul.mubr.msk.bf16.vlgmr.msra.gmra.mrb[0].mxu1 %vm366_vm1, %v1316_v10  ;;  %v1093_v33 = vcombine.low %v1055_v32, %v1055_v32  ;;  %v1094_v34 = vcombine.high %v1055_v32, %v1055_v32  ;;  %v1344_v38 = vld [vmem:[%s1627_s1 + $0x120] sm:$0xff]   ;;  %v1352_v47 = vld [vmem:[%s1627_s1 + $0x170] sm:$0xff]   ;;  %v1354_v49 = vld [vmem:[%s1627_s1 + $0x88] sm:$0xff]  }
  0x13   : > { %1224 = vmatpush3.bf16.msra.mxu1 %v1317_v9  ;;  %v170_v43 = vld [vmem:[%s1447_s6] sm:$0xff]  ;;  %v1353_v48 = vld [vmem:[%s1627_s1 + $0x130] sm:$0xff]   ;;  %v1355_v50 = vld [vmem:[%s1627_s1 + $0x178] sm:$0xff]  }
  0x14   : > { %1225 = vmatprep.subr.bf16.mxu1 %v1319_v12  ;;  %1205 = vmatpush3.bf16.msra.mxu0 %v1322_v15  ;;  %v1115_v44 = vcombine.low %v170_v43, %v170_v43  ;;  %v1116_v45 = vcombine.high %v170_v43, %v170_v43  ;;  %v1351_v46 = vld [vmem:[%s1627_s1 + $0x80] sm:$0xff]   ;;  %v1356_v51 = vld [vmem:[%s1627_s1 + $0x138] sm:$0xff]   ;;  %v1357_v53 = vld [vmem:[%s1447_s6 + $0x8] ss:$0 sps:$4 sm:$0xff]  }
  0x15   : > { %1206 = vmatprep.subr.bf16.mxu0 %v1324_v17  ;;  %402 = vmatprep.mubr.bf16.mxu0 %v1094_v34  ;;  %v1358_v52 = vld [vmem:[%s1627_s1 + $0x180] sm:$0xff]   ;;  %v1360_v55 = vld [vmem:[%s1627_s1 + $0x188] sm:$0xff]   ;;  %v1362_v58 = vld [vmem:[%s1627_s1 + $0x190] sm:$0xff]  }
  0x16   : > { %603 = vmatprep.mubr.bf16.mxu1 %v1116_v45  ;;  %v1359_v54 = vld [vmem:[%s1627_s1 + $0x140] sm:$0xff]   ;;  %v1361_v56 = vld [vmem:[%s1627_s1 + $0x148] sm:$0xff]   ;;  %v1363_v59 = vld [vmem:[%s1627_s1 + $0x150] sm:$0xff]  }
  0x17   : > { %1226 = vmatpush3.bf16.msra.mxu1 %v1321_v14  ;;  %v1364_v57 = vld [vmem:[%s1627_s1 + $0x1a0] sm:$0xff]   ;;  %v1367_v60 = vld [vmem:[%s1627_s1 + $0x1a8] sm:$0xff]   ;;  %v1365_v62 = vld [vmem:[%s1627_s1 + $0x198] sm:$0xff]  }
  0x18   : > { %1227 = vmatprep.subr.bf16.mxu1 %v1323_v16  ;;  %1207 = vmatpush3.bf16.msra.mxu0 %v1326_v19  ;;  %v653_v61 = vld [vmem:[%s1447_s6 + $0xc] sm:$0x11]  ;;  %v1370_v2 = vld [vmem:[%s1447_s6 + $0x8] ss:$12 sps:$4 sm:$0x1f]  }
  0x19   : > { %1208 = vmatprep.subr.bf16.mxu0 %v1328_v21  ;;  %v1173_v63 = vcombine.low %v170_v43, %v653_v61  ;;  %v1174_v0 = vcombine.high %v170_v43, %v653_v61  ;;  %v720_v7 = vshrl.u32 %v1370_v2, 16  ;;  %v722_v8 = vshll.u32 %v1370_v2, 16 }
  0x1b   : > { %1228 = vmatpush3.bf16.msra.mxu1 %v1325_v18  ;;  %v713_v3 = vshrl.u32 %v1174_v0, 16  ;;  %v715_v4 = vshll.u32 %v1174_v0, 16  ;;  %v706_v5 = vshrl.u32 %v1173_v63, 16  ;;  %v708_v6 = vshll.u32 %v1173_v63, 16 }
  0x1c   : > { %1229 = vmatprep.subr.bf16.mxu1 %v1327_v20  ;;  %1209 = vmatpush3.bf16.msra.mxu0 %v1330_v23  ;;  %v724_v11 = vrot.slane %v722_v8, 1 }
  0x1d   : > { %1210 = vmatprep.subr.bf16.mxu0 %v1332_v25  ;;  %v717_v9 = vrot.slane %v715_v4, 1  ;;  %v710_v10 = vrot.slane %v708_v6, 1 }
  0x1e   : > { %v725_v14 = vor.u32 %v724_v11, %v720_v7 }
  0x1f   : > { %1230 = vmatpush3.bf16.msra.mxu1 %v1329_v22  ;;  %v718_v12 = vor.u32 %v717_v9, %v713_v3  ;;  %v711_v13 = vor.u32 %v710_v10, %v706_v5 }
  0x20   : > { %1231 = vmatprep.subr.bf16.mxu1 %v1331_v24  ;;  %1211 = vmatpush3.bf16.msra.mxu0 %v1334_v27 }
  0x21   : > { %1212 = vmatprep.subr.bf16.mxu0 %v1336_v29 }
  0x23   : > { %1232 = vmatpush3.bf16.msra.mxu1 %v1333_v26 }
  0x24   : > { %1233 = vmatprep.subr.bf16.mxu1 %v1335_v28  ;;  %1213 = vmatpush3.bf16.msra.mxu0 %v1338_v31 }
  0x25   : > { %1248 = vmatprep.subr.bf16.mxu0 %v1343_v37 }
  0x27   : > { %1234 = vmatpush3.bf16.msra.mxu1 %v1337_v30  ;;  %403 = vmatmul.mubr.bf16.vlgmr.msra.gmra.mrb[0].mxu0 %v1093_v33 }
  0x28   : > { %1235 = vmatprep.subr.bf16.mxu1 %v1341_v35  ;;  %1249 = vmatpush3.bf16.msra.mxu0 %v1344_v38 }
  0x29   : > { %1250 = vmatprep.subr.bf16.mxu0 %v1347_v41  ;;  %871 = vmatprep.mubr.bf16.mxu0 %v718_v12 }
  0x2b   : > { %1236 = vmatpush3.bf16.msra.mxu1 %v1342_v36 }
  0x2c   : > { %1237 = vmatprep.subr.bf16.mxu1 %v1345_v39  ;;  %1251 = vmatpush3.bf16.msra.mxu0 %v1348_v42 }
  0x2d   : > { %1252 = vmatprep.subr.bf16.mxu0 %v1352_v47 }
  0x2f   : > { %1238 = vmatpush3.bf16.msra.mxu1 %v1346_v40 }
  0x30   : > { %1281 = vmatprep.subr.bf16.mxu1 %v1383_v1  ;;  %1253 = vmatpush3.bf16.msra.mxu0 %v1353_v48 }
  0x31   : > { %1254 = vmatprep.subr.bf16.mxu0 %v1355_v50 }
  0x32   : > { %604 = vmatmul.mubr.bf16.vlgmr.msra.gmra.mrb[4].mxu1 %v1115_v44 }
  0x33   : > { %1282 = vmatpush3.bf16.msra.mxu1 %v1351_v46  ;;  %1285 = vmatprep.mubr.msk.bf16.mxu1 %vm1384_vm0, %v1383_v1  ;;  %v1195_v46 = vld [vmem:[%s1628_s2] ss:$0 sm:$0xff] }
  0x34   : > { %1283 = vmatprep.subr.bf16.mxu1 %v1383_v1  ;;  %1255 = vmatpush3.bf16.msra.mxu0 %v1356_v51 }
  0x35   : > { %1256 = vmatprep.subr.bf16.mxu0 %v1358_v52 }
  0x37   : > { %1284 = vmatpush3.bf16.msra.mxu1 %v1354_v49 }
  0x38   : > { %1289 = vmatprep.subr.bf16.mxu1 %v1383_v1  ;;  %1257 = vmatpush3.bf16.msra.mxu0 %v1359_v54 }
  0x39   : > { %1258 = vmatprep.subr.bf16.mxu0 %v1360_v55 }
  0x3a   : > { %1286 = vmatmul.mubr.msk.bf16.vlgmr.msra.gmra.mrb[8].mxu1 %vm366_vm1, %v1357_v53 }
  0x3b   : > { %1293 = vmatprep.mubr.msk.bf16.mxu1 %vm1384_vm0, %v1383_v1  ;;  %1290 = vmatpush3.bf16.msra.mxu1 %v1364_v57 }
  0x3c   : > { %1291 = vmatprep.subr.bf16.mxu1 %v1383_v1  ;;  %1259 = vmatpush3.bf16.msra.mxu0 %v1361_v56  ;;  %v1366_v1 = vld [vmem:[%s1627_s1 + $0x158] sm:$0xff]  }
  0x3d   : > { %1260 = vmatprep.subr.bf16.mxu0 %v1362_v58 }
  0x3f   : > { %1292 = vmatpush3.bf16.msra.mxu1 %v1367_v60 }
  0x40   : > { %1261 = vmatpush3.bf16.msra.mxu0 %v1363_v59  ;;  %v923_v59 = vld [vmem:[%s1628_s2 + $0x3] sm:$0x1] }
  0x41   : > { %1262 = vmatprep.subr.bf16.mxu0 %v1365_v62  ;;  %v924_v62 = vld [vmem:[%s1628_s2 + $0x4] sm:$0x1] }
  0x42   : > { %1294 = vmatmul.mubr.msk.bf16.vlgmr.msra.gmra.mrb[12].mxu1 %vm366_vm1, %v725_v14 }
  0x44   : > { %1263 = vmatpush3.bf16.msra.mxu0 %v1366_v1 }
  0x47   : > { %872 = vmatmul.mubr.bf16.vlgmr.msra.gmra.mrb[4].mxu0 %v711_v13 }
  0xe5   : > { %v444_v15 = vpop.f32.mrb[0].mxu1 }
  0xe6   : > { %v1279_v16 = vpop.f32.mrb[1].mxu1 }
  0xe7   : > { %v447_v17 = vpop.f32.mrb[2].mxu1 }
  0xe8   : > { %v1280_v18 = vpop.f32.mrb[3].mxu1 }
  0xfa   : > { %v1214_v19 = vpop.f32.mrb[0].mxu0 }
  0xfb   : > { %v1215_v20 = vpop.f32.mrb[1].mxu0 }
  0xfc   : > { %v1216_v21 = vadd.f32 %v1215_v20, %v1214_v19  ;;  %v1217_v22 = vpop.f32.mrb[2].mxu0 }
  0xfd   : > { %v1218_v23 = vpop.f32.mrb[3].mxu0  ;;  %v981_v22 = vlaneseq }
  0xfe   : > { %v445_v24 = vadd.f32 %v1216_v21, %v444_v15 }
 0x105   : > { %v1239_v25 = vpop.f32.mrb[4].mxu1 }
 0x106   : > { %v1240_v26 = vpop.f32.mrb[5].mxu1 }
 0x107   : > { %v1241_v27 = vadd.f32 %v1240_v26, %v1239_v25  ;;  %v1242_v28 = vpop.f32.mrb[6].mxu1 }
 0x108   : > { %v1243_v29 = vpop.f32.mrb[7].mxu1 }
 0x109   : > { %v606_v30 = vadd.f32 %v1241_v27, %v445_v24  ;;  %v982_v24 = vshrl.u32 %v981_v22, 7  ;;  %v921_v29 = vld [vmem:[%s1628_s2 + $0x1] sm:$0x1] }
 0x10d   : > { %v645_v31 = vpop.f32.mrb[8].mxu1 }
 0x10e   : > { %v646_v32 = vadd.f32 %v645_v31, %v606_v30  ;;  %v1287_v33 = vpop.f32.mrb[9].mxu1  ;;  %v983_v31 = vsub.s32 0, %v982_v24 }
 0x10f   : > { %v648_v34 = vpop.f32.mrb[10].mxu1 }
 0x110   : > { %v1288_v35 = vpop.f32.mrb[11].mxu1 }
 0x111   : > { %v922_v35 = vld [vmem:[%s1628_s2 + $0x2] sm:$0x1] }
 0x115   : > { %v913_v36 = vpop.f32.mrb[12].mxu1 }
 0x116   : > { %v1295_v38 = vpop.f32.mrb[13].mxu1 }
 0x117   : > { %v916_v40 = vpop.f32.mrb[14].mxu1 }
 0x118   : > { %v1296_v43 = vpop.f32.mrb[15].mxu1 }
 0x11a   : > { %v1264_v37 = vpop.f32.mrb[4].mxu0 }
 0x11b   : > { %v1265_v39 = vpop.f32.mrb[5].mxu0 }
 0x11c   : > { %v1266_v41 = vadd.f32 %v1265_v39, %v1264_v37  ;;  %v1267_v42 = vpop.f32.mrb[6].mxu0 }
 0x11d   : > { %v1268_v44 = vpop.f32.mrb[7].mxu0 }
 0x11e   : > { %v914_v45 = vadd.f32 %v1266_v41, %v913_v36 }
 0x120   : > { %v919_v47 = vadd.f32 %v914_v45, %v646_v32 }
 0x122   : > { %v929_v48 = vadd.f32 %v1195_v46, %v919_v47 }
 0x124   : > { %v930_v49 = vrot.slane %v929_v48, 4  ;;  %v936_v50 = vmul.f32 %v929_v48, %v929_v48 }
 0x126   : > { %v931_v51 = vadd.f32 %v930_v49, %v929_v48  ;;  %v937_v52 = vrot.slane %v936_v50, 4 }
 0x128   : > { %v932_v53 = vrot.slane %v931_v51, 2  ;;  %v938_v54 = vadd.f32 %v937_v52, %v936_v50 }
 0x12a   : > { %v933_v55 = vadd.f32 %v932_v53, %v931_v51  ;;  %v939_v56 = vrot.slane %v938_v54, 2 }
 0x12c   : > { %v934_v57 = vrot.slane %v933_v55, 1  ;;  %v940_v58 = vadd.f32 %v939_v56, %v938_v54 }
 0x12e   : > { %v935_v60 = vadd.f32 %v934_v57, %v933_v55  ;;  %v941_v61 = vrot.slane %v940_v58, 1 }
 0x130   : > { %v943_v63 = vmul.f32 %v935_v60, %v923_v59  ;;  %v942_v0 = vadd.f32 %v941_v61, %v940_v58  ;;  %v948_v4 = vmul.f32 %v935_v60, %v924_v62 }
 0x132   : > { %v945_v2 = vsel %vm944_vm2, %v943_v63, 0.0  ;;  %v952_v3 = vmul.f32 %v942_v0, %v923_v59  ;;  %v956_v6 = vmul.f32 %v942_v0, %v924_v62  ;;  %v949_v1 = vsel %vm944_vm2, %v948_v4, 0.0 }
 0x133   : > { %946 = vadd.xlane.f32.xlu0 %v945_v2 }
 0x134   : > { %v953_v5 = vsel %vm944_vm2, %v952_v3, 0.0  ;;  %v957_v7 = vsel %vm944_vm2, %v956_v6, 0.0 }
 0x135   : > { %954 = vadd.xlane.f32.xlu1 %v953_v5 }
 0x137   : > { %950 = vadd.xlane.f32.xlu0 %v949_v1 }
 0x139   : > { %958 = vadd.xlane.f32.xlu1 %v957_v7 }
 0x1c0   : > { %v947_v8 = vpop.xlane.xlu0 %946 }
 0x1c1   : > { %v960_v9 = vmul.f32 0.001953125, %v947_v8 }
 0x1c2   : > { %v955_v10 = vpop.xlane.xlu1 %954 }
 0x1c3   : > { %v963_v11 = vmul.f32 %v960_v9, %v960_v9  ;;  %v962_v12 = vmul.f32 0.001953125, %v955_v10  ;;  %v972_v30 = vmul.f32 %v960_v9, %v923_v59 }
 0x1c4   : > { %v951_v13 = vpop.xlane.xlu0 %950 }
 0x1c5   : > { %v964_v14 = vsub.f32 %v962_v12, %v963_v11  ;;  %v961_v15 = vmul.f32 0.001953125, %v951_v13 }
 0x1c6   : > { %v959_v16 = vpop.xlane.xlu1 %958 }
 0x1c7   : > { %v968_v17 = vadd.f32 1e-05, %v964_v14  ;;  %v966_v18 = vmul.f32 %v961_v15, %v961_v15  ;;  %v965_v19 = vmul.f32 0.001953125, %v959_v16  ;;  %v973_v27 = vmul.f32 %v961_v15, %v924_v62 }
 0x1c9   : > { %v967_v20 = vsub.f32 %v965_v19, %v966_v18  ;;  %1371 = vrsqrt.f32 %v968_v17  ;;  %v974_v33 = vadd.f32 %v973_v27, %v972_v30 }
 0x1cb   : > { %v970_v21 = vadd.f32 1e-05, %v967_v20 }
 0x1cd   : > { %1373 = vrsqrt.f32 %v970_v21 }
 0x1d3   : > { %v1372_v23 = vpop.eup %1371 }
 0x1d4   : > { %v975_v26 = vmul.f32 %v1372_v23, %v923_v59 }
 0x1d7   : > { %v1374_v25 = vpop.eup %1373 }
 0x1d8   : > { %v976_v28 = vmul.f32 %v1374_v25, %v924_v62 }
 0x1da   : > { %v977_v32 = vadd.f32 %v976_v28, %v975_v26 }
 0x1dc   : > { %v978_v34 = vmul.f32 %v977_v32, %v921_v29 }
 0x1de   : > { %v979_v36 = vmul.f32 %v978_v34, %v974_v33  ;;  %v984_v37 = vrot.slane %v978_v34, %v983_v31 }
 0x1e0   : > { %v980_v38 = vsub.f32 %v922_v35, %v979_v36  ;;  %v985_v39 = vmul.f32 %v984_v37, %v929_v48 }
 0x1e2   : > { %v989_v40 = vrot.slane %v980_v38, %v983_v31 }
 0x1e4   : > { %v990_v41 = vadd.f32 %v989_v40, %v985_v39 }
 0x1e6   : > { %vm991_vm3 = vcmp.gt.f32.partialorder %v990_v41, 0.0  ;;  %v992_v42 = vmul.f32 0.2, %v990_v41 }
 0x1e8   : > { %v993_v43 = vsel %vm991_vm3, %v990_v41, %v992_v42 }
 0x1e9   : > { %994 = vst [vmem:[%s168_s17] sm:$0xff] %v993_v43 }
 0x1ea PF: > { %s13_s12 = sadd.s32 1, %s1381_s12  }
 0x1eb   : > { %p10_p4 = scmp.ge.s32.totalorder %s13_s12, 4  }
 0x1ed   :  { %12 = sbr.rel (!%p10_p4) target bundleno = 1 (0x1), region = 65 }

// kernel: _lambda_.6
= control target key start
LH: loop header
LB: loop body
LE: loop exit
PB: predicated region body
PF: predicated region fallthrough
CT: control target
= control target key end

     0   :  { %s877_s12 = smov 0   ;;  %s1054_s0 = inlined_call_operand.vmem [shape: bf16[2,1,10,160], index: 0, kind: input, shape index: {}]   ;;  %s1055_s1 = inlined_call_operand.vmem [shape: bf16[3,160,128], index: 1, kind: input, shape index: {}]   ;;  %s1056_s2 = inlined_call_operand.vmem [shape: f32[5,128], index: 2, kind: input, shape index: {}]   ;;  %s1057_s3 = inlined_call_operand.vmem [shape: f32[2,8,128], index: 3, kind: output, shape index: {}]  }
   0x1 LB: > { %s708_s13 = sadd.s32 4294967295, %s854_s12   ;;  %p712_p0 = scmp.ge.s32.totalorder %s854_s12, 1  ;;  %s854_s12 = sphi %s877_s12, %s13_s12  }
   0x2   : > { %p137_p1 = scmp.lt.s32.totalorder %s854_s12, 3 }
   0x4   : > { %p138_p2 = pnand %p712_p0, %p137_p1 }
   0x5   : > { %v808_v0 = vld [vmem:[%s1055_s1 + $0x50] sm:$0xff] (!%p138_p2)   ;;  %v856_v1 = vmov (!%p138_p2), 0   ;;  %v809_v2 = vld [vmem:[%s1055_s1] sm:$0xff] (!%p138_p2)   ;;  %v810_v3 = vld [vmem:[%s1055_s1 + $0x58] sm:$0xff] (!%p138_p2)   ;;  %p160_p3 = scmp.lt.s32.totalorder (!%p138_p2), %s708_s13, 1  ;;  %vm296_vm0 = vcmask (!%p138_p2), 261120  }
   0x6   : > { %141 = sbr.rel (%p138_p2) target bundleno = 500 (0x1f4), region = 32  ;;  %300 = vmatprep.subr.bf16.mxu0 (!%p138_p2), %v856_v1  ;;  %406 = vmatprep.subr.bf16.mxu1 (!%p138_p2), %v856_v1  ;;  %v811_v4 = vld [vmem:[%s1055_s1 + $0x8] sm:$0xff] (!%p138_p2)   ;;  %v812_v5 = vld [vmem:[%s1055_s1 + $0x60] sm:$0xff] (!%p138_p2)   ;;  %v813_v6 = vld [vmem:[%s1055_s1 + $0x10] sm:$0xff] (!%p138_p2)   ;;  %vm604_vm1 = vcmask (!%p138_p2), 1040384  }
   0x7   : > { %301 = vmatpush1.bf16.msra.mxu0 (!%p138_p2), %v808_v0  ;;  %407 = vmatpush1.bf16.msra.mxu1 (!%p138_p2), %v809_v2  ;;  %v814_v7 = vld [vmem:[%s1055_s1 + $0x68] sm:$0xff] (!%p138_p2)   ;;  %v815_v8 = vld [vmem:[%s1055_s1 + $0x18] sm:$0xff] (!%p138_p2)   ;;  %v816_v9 = vld [vmem:[%s1055_s1 + $0x70] sm:$0xff] (!%p138_p2)  }
   0x8   : > { %302 = vmatprep.subr.bf16.mxu0 (!%p138_p2), %v856_v1  ;;  %408 = vmatprep.subr.bf16.mxu1 (!%p138_p2), %v856_v1  ;;  %v817_v10 = vld [vmem:[%s1055_s1 + $0x20] sm:$0xff] (!%p138_p2)   ;;  %v818_v11 = vld [vmem:[%s1055_s1 + $0x78] sm:$0xff] (!%p138_p2)   ;;  %v819_v12 = vld [vmem:[%s1055_s1 + $0x28] sm:$0xff] (!%p138_p2)  }
   0x9   : > { %v820_v17 = vld [vmem:[%s1055_s1 + $0x80] sm:$0xff] (!%p138_p2)   ;;  %v821_v18 = vld [vmem:[%s1055_s1 + $0x30] sm:$0xff] (!%p138_p2)   ;;  %v822_v21 = vld [vmem:[%s1055_s1 + $0x88] sm:$0xff] (!%p138_p2)  }
   0xa   : > { %v823_v24 = vld [vmem:[%s1055_s1 + $0x38] sm:$0xff] (!%p138_p2)   ;;  %v824_v27 = vld [vmem:[%s1055_s1 + $0x90] sm:$0xff] (!%p138_p2)   ;;  %v825_v28 = vld [vmem:[%s1055_s1 + $0x40] sm:$0xff] (!%p138_p2)  }
   0xb   : > { %303 = vmatpush1.bf16.msra.mxu0 (!%p138_p2), %v810_v3  ;;  %409 = vmatpush1.bf16.msra.mxu1 (!%p138_p2), %v811_v4  ;;  %v826_v32 = vld [vmem:[%s1055_s1 + $0x98] sm:$0xff] (!%p138_p2)   ;;  %v827_v33 = vld [vmem:[%s1055_s1 + $0x48] sm:$0xff] (!%p138_p2)   ;;  %v832_v37 = vld [vmem:[%s1055_s1 + $0xa0] sm:$0xff] (!%p138_p2)  }
   0xc   : > { %304 = vmatprep.subr.bf16.mxu0 (!%p138_p2), %v856_v1  ;;  %410 = vmatprep.subr.bf16.mxu1 (!%p138_p2), %v856_v1  ;;  %v833_v39 = vld [vmem:[%s1055_s1 + $0xa8] sm:$0xff] (!%p138_p2)   ;;  %v834_v40 = vld [vmem:[%s1055_s1 + $0xb0] sm:$0xff] (!%p138_p2)   ;;  %v835_v41 = vld [vmem:[%s1055_s1 + $0xb8] sm:$0xff] (!%p138_p2)  }
   0xd   : > { %s1059_s13 = smov (!%p160_p3, %s708_s13), 1  ;;  %v836_v42 = vld [vmem:[%s1055_s1 + $0xc0] sm:$0xff]   ;;  %v837_v43 = vld [vmem:[%s1055_s1 + $0xc8] sm:$0xff]   ;;  %v838_v44 = vld [vmem:[%s1055_s1 + $0xd0] sm:$0xff]  }
   0xe   : > { %s798_s5 = sshll.u32 %s1059_s13, 4  ;;  %v839_v45 = vld [vmem:[%s1055_s1 + $0xd8] sm:$0xff]   ;;  %v840_v46 = vld [vmem:[%s1055_s1 + $0xe0] sm:$0xff]   ;;  %v841_v48 = vld [vmem:[%s1055_s1 + $0xe8] sm:$0xff]   ;;  %s715_s11 = sshll.u32 %s1059_s13, 3 }
   0xf   : > { %305 = vmatpush1.bf16.msra.mxu0 %v812_v5  ;;  %411 = vmatpush1.bf16.msra.mxu1 %v813_v6  ;;  %s931_s10 = scalar_lea.vmem %s1054_s0, %s798_s5  ;;  %v795_v60 = vld [vmem:[%s1056_s2] ss:$0 sm:$0xff]  ;;  %s168_s16 = scalar_lea.vmem %s1057_s3, %s715_s11 }
  0x10   : > { %306 = vmatprep.subr.bf16.mxu0 %v856_v1  ;;  %412 = vmatprep.subr.bf16.mxu1 %v856_v1  ;;  %v170_v13 = vld [vmem:[%s931_s10] sm:$0xff]  ;;  %v943_v14 = vld [vmem:[%s931_s10 + $0x8] sm:$0x11] }
  0x11   : > { %v737_v15 = vcombine.high %v170_v13, %v943_v14  ;;  %v750_v16 = vcombine.high %v170_v13, %v170_v13  ;;  %v736_v23 = vcombine.low %v170_v13, %v943_v14  ;;  %v446_v29 = vld [vmem:[%s931_s10] sm:$0xee]  ;;  %v749_v36 = vcombine.low %v170_v13, %v170_v13 }
  0x12   : > { %v783_v34 = vcombine.high %v446_v29, %v943_v14  ;;  %v782_v47 = vcombine.low %v446_v29, %v943_v14 }
  0x13   : > { %307 = vmatpush1.bf16.msra.mxu0 %v814_v7  ;;  %413 = vmatpush1.bf16.msra.mxu1 %v815_v8  ;;  %v229_v19 = vshrl.u32 %v737_v15, 16  ;;  %v231_v20 = vshll.u32 %v737_v15, 16  ;;  %v224_v26 = vshll.u32 %v736_v23, 16  ;;  %v222_v30 = vshrl.u32 %v736_v23, 16  ;;  %v584_v15 = vld [vmem:[%s1056_s2 + $0x4] sm:$0x1] }
  0x14   : > { %308 = vmatprep.subr.bf16.mxu0 %v856_v1  ;;  %414 = vmatprep.subr.bf16.mxu1 %v856_v1  ;;  %v474_v38 = vrot.slane %v783_v34, 1  ;;  %v473_v49 = vrot.slane %v782_v47, 1 }
  0x15   : > { %761 = vmatprep.mubr.msk.bf16.mxu1 %vm296_vm0, %v750_v16  ;;  %v233_v22 = vrot.slane %v231_v20, 1  ;;  %v226_v31 = vrot.slane %v224_v26, 1 }
  0x17   : > { %309 = vmatpush1.bf16.msra.mxu0 %v816_v9  ;;  %415 = vmatpush1.bf16.msra.mxu1 %v817_v10  ;;  %v234_v25 = vor.u32 %v233_v22, %v229_v19  ;;  %v227_v35 = vor.u32 %v226_v31, %v222_v30 }
  0x18   : > { %310 = vmatprep.subr.bf16.mxu0 %v856_v1  ;;  %416 = vmatprep.subr.bf16.mxu1 %v856_v1 }
  0x19   : > { %748 = vmatprep.mubr.msk.bf16.mxu0 %vm296_vm0, %v234_v25 }
  0x1b   : > { %311 = vmatpush1.bf16.msra.mxu0 %v818_v11  ;;  %417 = vmatpush1.bf16.msra.mxu1 %v819_v12  ;;  %v583_v12 = vld [vmem:[%s1056_s2 + $0x3] sm:$0x1] }
  0x1c   : > { %312 = vmatprep.subr.bf16.mxu0 %v856_v1  ;;  %418 = vmatprep.subr.bf16.mxu1 %v856_v1 }
  0x1f   : > { %313 = vmatpush1.bf16.msra.mxu0 %v820_v17  ;;  %419 = vmatpush1.bf16.msra.mxu1 %v821_v18 }
  0x20   : > { %314 = vmatprep.subr.bf16.mxu0 %v856_v1  ;;  %420 = vmatprep.subr.bf16.mxu1 %v856_v1 }
  0x23   : > { %315 = vmatpush1.bf16.msra.mxu0 %v822_v21  ;;  %421 = vmatpush1.bf16.msra.mxu1 %v823_v24 }
  0x24   : > { %316 = vmatprep.subr.bf16.mxu0 %v856_v1  ;;  %422 = vmatprep.subr.bf16.mxu1 %v856_v1 }
  0x27   : > { %317 = vmatpush1.bf16.msra.mxu0 %v824_v27  ;;  %423 = vmatpush1.bf16.msra.mxu1 %v825_v28 }
  0x28   : > { %318 = vmatprep.subr.bf16.mxu0 %v856_v1  ;;  %424 = vmatprep.subr.bf16.mxu1 %v856_v1 }
  0x2b   : > { %319 = vmatpush1.bf16.msra.mxu0 %v826_v32  ;;  %425 = vmatpush1.bf16.msra.mxu1 %v827_v33 }
  0x2c   : > { %539 = vmatprep.subr.bf16.mxu0 %v856_v1 }
  0x2e   : > { %333 = vmatmul.mubr.bf16.vlgmr.msra.gmra.mrb[0].mxu0 %v227_v35  ;;  %439 = vmatmul.mubr.bf16.vlgmr.msra.gmra.mrb[0].mxu1 %v749_v36 }
  0x2f   : > { %540 = vmatpush1.bf16.msra.mxu0 %v832_v37  ;;  %794 = vmatprep.mubr.msk.bf16.mxu0 %vm296_vm0, %v474_v38 }
  0x30   : > { %541 = vmatprep.subr.bf16.mxu0 %v856_v1 }
  0x33   : > { %542 = vmatpush1.bf16.msra.mxu0 %v833_v39  ;;  %v641_v39 = vlaneseq }
  0x34   : > { %543 = vmatprep.subr.bf16.mxu0 %v856_v1 }
  0x37   : > { %544 = vmatpush1.bf16.msra.mxu0 %v834_v40 }
  0x38   : > { %545 = vmatprep.subr.bf16.mxu0 %v856_v1 }
  0x3b   : > { %546 = vmatpush1.bf16.msra.mxu0 %v835_v41  ;;  %v642_v41 = vshrl.u32 %v641_v39, 7 }
  0x3c   : > { %547 = vmatprep.subr.bf16.mxu0 %v856_v1 }
  0x3f   : > { %548 = vmatpush1.bf16.msra.mxu0 %v836_v42 }
  0x40   : > { %549 = vmatprep.subr.bf16.mxu0 %v856_v1 }
  0x43   : > { %550 = vmatpush1.bf16.msra.mxu0 %v837_v43 }
  0x44   : > { %551 = vmatprep.subr.bf16.mxu0 %v856_v1 }
  0x47   : > { %552 = vmatpush1.bf16.msra.mxu0 %v838_v44 }
  0x48   : > { %553 = vmatprep.subr.bf16.mxu0 %v856_v1 }
  0x4b   : > { %554 = vmatpush1.bf16.msra.mxu0 %v839_v45 }
  0x4c   : > { %555 = vmatprep.subr.bf16.mxu0 %v856_v1 }
  0x4f   : > { %556 = vmatpush1.bf16.msra.mxu0 %v840_v46  ;;  %v581_v46 = vld [vmem:[%s1056_s2 + $0x1] sm:$0x1] }
  0x50   : > { %557 = vmatprep.subr.bf16.mxu0 %v856_v1 }
  0x53   : > { %558 = vmatpush1.bf16.msra.mxu0 %v841_v48  ;;  %v643_v48 = vsub.s32 0, %v642_v41 }
  0x56   : > { %572 = vmatmul.mubr.bf16.vlgmr.msra.gmra.mrb[4].mxu0 %v473_v49 }
 0x101   : > { %v334_v50 = vpop.f32.mrb[0].mxu0  ;;  %v440_v52 = vpop.f32.mrb[0].mxu1 }
 0x102   : > { %v336_v51 = vpop.f32.mrb[1].mxu0  ;;  %v441_v53 = vadd.f32 %v440_v52, %v334_v50  ;;  %v442_v55 = vpop.f32.mrb[1].mxu1  ;;  %v582_v52 = vld [vmem:[%s1056_s2 + $0x2] sm:$0x1] }
 0x103   : > { %v337_v54 = vpop.f32.mrb[2].mxu0  ;;  %v443_v57 = vpop.f32.mrb[2].mxu1 }
 0x104   : > { %v338_v56 = vpop.f32.mrb[3].mxu0  ;;  %v444_v58 = vpop.f32.mrb[3].mxu1 }
 0x129   : > { %v573_v59 = vpop.f32.mrb[4].mxu0 }
 0x12a   : > { %v579_v61 = vadd.f32 %v573_v59, %v441_v53  ;;  %v575_v62 = vpop.f32.mrb[5].mxu0 }
 0x12b   : > { %v576_v63 = vpop.f32.mrb[6].mxu0 }
 0x12c   : > { %v1028_v0 = vadd.f32 %v795_v60, %v579_v61  ;;  %v577_v1 = vpop.f32.mrb[7].mxu0 }
 0x12e   : > { %v590_v2 = vrot.slane %v1028_v0, 4  ;;  %v596_v3 = vmul.f32 %v1028_v0, %v1028_v0 }
 0x130   : > { %v591_v4 = vadd.f32 %v590_v2, %v1028_v0  ;;  %v597_v5 = vrot.slane %v596_v3, 4 }
 0x132   : > { %v592_v6 = vrot.slane %v591_v4, 2  ;;  %v598_v7 = vadd.f32 %v597_v5, %v596_v3 }
 0x134   : > { %v593_v8 = vadd.f32 %v592_v6, %v591_v4  ;;  %v599_v9 = vrot.slane %v598_v7, 2 }
 0x136   : > { %v594_v10 = vrot.slane %v593_v8, 1  ;;  %v600_v11 = vadd.f32 %v599_v9, %v598_v7 }
 0x138   : > { %v595_v13 = vadd.f32 %v594_v10, %v593_v8  ;;  %v601_v14 = vrot.slane %v600_v11, 1 }
 0x13a   : > { %v603_v16 = vmul.f32 %v595_v13, %v583_v12  ;;  %v602_v17 = vadd.f32 %v601_v14, %v600_v11  ;;  %v608_v20 = vmul.f32 %v595_v13, %v584_v15 }
 0x13c   : > { %v605_v18 = vsel %vm604_vm1, %v603_v16, 0.0  ;;  %v612_v19 = vmul.f32 %v602_v17, %v583_v12  ;;  %v616_v22 = vmul.f32 %v602_v17, %v584_v15  ;;  %v609_v23 = vsel %vm604_vm1, %v608_v20, 0.0 }
 0x13d   : > { %606 = vadd.xlane.f32.xlu0 %v605_v18 }
 0x13e   : > { %v613_v21 = vsel %vm604_vm1, %v612_v19, 0.0  ;;  %v617_v24 = vsel %vm604_vm1, %v616_v22, 0.0 }
 0x13f   : > { %614 = vadd.xlane.f32.xlu1 %v613_v21 }
 0x141   : > { %610 = vadd.xlane.f32.xlu0 %v609_v23 }
 0x143   : > { %618 = vadd.xlane.f32.xlu1 %v617_v24 }
 0x1ca   : > { %v607_v25 = vpop.xlane.xlu0 %606 }
 0x1cb   : > { %v620_v26 = vmul.f32 0.001953125, %v607_v25 }
 0x1cc   : > { %v615_v27 = vpop.xlane.xlu1 %614 }
 0x1cd   : > { %v623_v28 = vmul.f32 %v620_v26, %v620_v26  ;;  %v622_v29 = vmul.f32 0.001953125, %v615_v27  ;;  %v632_v47 = vmul.f32 %v620_v26, %v583_v12 }
 0x1ce   : > { %v611_v30 = vpop.xlane.xlu0 %610 }
 0x1cf   : > { %v624_v31 = vsub.f32 %v622_v29, %v623_v28  ;;  %v621_v32 = vmul.f32 0.001953125, %v611_v30 }
 0x1d0   : > { %v619_v33 = vpop.xlane.xlu1 %618 }
 0x1d1   : > { %v628_v34 = vadd.f32 1e-05, %v624_v31  ;;  %v626_v35 = vmul.f32 %v621_v32, %v621_v32  ;;  %v625_v36 = vmul.f32 0.001953125, %v619_v33  ;;  %v633_v44 = vmul.f32 %v621_v32, %v584_v15 }
 0x1d3   : > { %v627_v37 = vsub.f32 %v625_v36, %v626_v35  ;;  %844 = vrsqrt.f32 %v628_v34  ;;  %v634_v50 = vadd.f32 %v633_v44, %v632_v47 }
 0x1d5   : > { %v630_v38 = vadd.f32 1e-05, %v627_v37 }
 0x1d7   : > { %846 = vrsqrt.f32 %v630_v38 }
 0x1dd   : > { %v845_v40 = vpop.eup %844 }
 0x1de   : > { %v635_v43 = vmul.f32 %v845_v40, %v583_v12 }
 0x1e1   : > { %v847_v42 = vpop.eup %846 }
 0x1e2   : > { %v636_v45 = vmul.f32 %v847_v42, %v584_v15 }
 0x1e4   : > { %v637_v49 = vadd.f32 %v636_v45, %v635_v43 }
 0x1e6   : > { %v638_v51 = vmul.f32 %v637_v49, %v581_v46 }
 0x1e8   : > { %v639_v53 = vmul.f32 %v638_v51, %v634_v50  ;;  %v644_v54 = vrot.slane %v638_v51, %v643_v48 }
 0x1ea   : > { %v640_v55 = vsub.f32 %v582_v52, %v639_v53  ;;  %v645_v56 = vmul.f32 %v644_v54, %v1028_v0 }
 0x1ec   : > { %v649_v57 = vrot.slane %v640_v55, %v643_v48 }
 0x1ee   : > { %v650_v58 = vadd.f32 %v649_v57, %v645_v56 }
 0x1f0   : > { %vm651_vm2 = vcmp.gt.f32.partialorder %v650_v58, 0.0  ;;  %v652_v59 = vmul.f32 0.2, %v650_v58 }
 0x1f2   : > { %v653_v60 = vsel %vm651_vm2, %v650_v58, %v652_v59 }
 0x1f3   : > { %654 = vst [vmem:[%s168_s16] sm:$0xff] %v653_v60 }
 0x1f4 PF: > { %s13_s12 = sadd.s32 1, %s854_s12  }
 0x1f5   : > { %p10_p4 = scmp.ge.s32.totalorder %s13_s12, 4  }
 0x1f7   :  { %12 = sbr.rel (!%p10_p4) target bundleno = 1 (0x1), region = 64 }

// kernel: tile.39
= control target key start
LH: loop header
LB: loop body
LE: loop exit
PB: predicated region body
PF: predicated region fallthrough
CT: control target
= control target key end

     0   :  { %vm28_vm0 = vcmask 1044484   ;;  %vm30_vm1 = vcmask 130048   ;;  %s73_s16 = smov 16   ;;  %s74_s19 = smov 32   ;;  %vm40_vm2 = vcmask 523648   ;;  %vm50_vm3 = vcmask 392448   ;;  %s117_s0 = inlined_call_operand.vmem [shape: f32[5,4,16], index: 0, kind: input, shape index: {}]   ;;  %s118_s1 = inlined_call_operand.vmem [shape: f32[5,64], index: 1, kind: output, shape index: {}]  }
   0x1   :  { %v65_v0 = vld [vmem:[%s117_s0 + $0x10] sm:$0xf]  ;;  %v66_v1 = vld [vmem:[%s117_s0 + $0xc] sm:$0xf]  ;;  %v67_v2 = vld [vmem:[%s117_s0 + $0x8] sm:$0xf] }
   0x2   :  { %8 = vst [vmem:[#allocation0 + $0x20] sm:$0xf] %v65_v0  ;;  %13 = vst [vmem:[#allocation0 + $0x18] sm:$0xf] %v66_v1  ;;  %v68_v3 = vld [vmem:[%s117_s0 + $0x4] sm:$0xf] }
   0x3   :  { %18 = vst [vmem:[#allocation0 + $0x10] sm:$0xf] %v67_v2  ;;  %v23_v4 = vld [vmem:[%s117_s0] sm:$0xf]  ;;  %22 = vst [vmem:[#allocation0 + $0x8] sm:$0xf] %v68_v3 }
   0x4   :  { %24 = vst [vmem:[#allocation0] sm:$0xf] %v23_v4  ;;  %s72_s0 = smov 48   ;;  %vm60_vm4 = vcmask 261248  }
   0x9   :  { %v35_v5 = vld [vmem:[#allocation0 + $0x1f] sm:$0x10]   ;;  %v45_v6 = vld [vmem:[#allocation0 + $0x1e] sm:$0x10]   ;;  %v55_v7 = vld [vmem:[#allocation0 + $0x1d] sm:$0x10]  }
   0xa   :  { %v27_v14 = vld [vmem:[#allocation0 + $0x1c] sm:$0x10]  }
   0xb   :  { %v33_v8 = vld [vmem:[#allocation0 + $0x3] ss:$8 sm:$0xf]   ;;  %v43_v9 = vld [vmem:[#allocation0 + $0x2] ss:$8 sm:$0xf]  }
   0xc   :  { %v37_v10 = vsel %vm28_vm0, %v35_v5, %v33_v8  ;;  %v53_v11 = vld [vmem:[#allocation0 + $0x1] ss:$8 sm:$0xf]   ;;  %v25_v12 = vld [vmem:[#allocation0] ss:$8 sm:$0xf]   ;;  %v47_v15 = vsel %vm28_vm0, %v45_v6, %v43_v9 }
   0xd   :  { %38 = vrot.lane.b32.xlu0 %v37_v10, %s72_s0  ;;  %v57_v13 = vsel %vm28_vm0, %v55_v7, %v53_v11  ;;  %v29_v16 = vsel %vm28_vm0, %v27_v14, %v25_v12 }
   0xe   :  { %58 = vrot.lane.b32.xlu1 %v57_v13, %s73_s16  ;;  %31 = vst.msk [vmem:[%s118_s1] sm:$0x1f] %vm30_vm1, %v29_v16  }
  0x11   :  { %48 = vrot.lane.b32.xlu0 %v47_v15, %s74_s19 }
  0x7f   :  { %v39_v17 = vpop.permute.xlu0 %38  }
  0x80   :  { %41 = vst.msk [vmem:[%s118_s1] sm:$0x1f] %vm40_vm2, %v39_v17   ;;  %v59_v18 = vpop.permute.xlu1 %58  }
  0x83   :  { %v49_v19 = vpop.permute.xlu0 %48  }
  0x84   :  { %51 = vst.msk [vmem:[%s118_s1] sm:$0x1f] %vm50_vm3, %v49_v19  }
  0x85   :  { %61 = vst.msk [vmem:[%s118_s1] sm:$0x1f] %vm60_vm4, %v59_v18  }

// kernel: _lambda_.7
= control target key start
LH: loop header
LB: loop body
LE: loop exit
PB: predicated region body
PF: predicated region fallthrough
CT: control target
= control target key end

     0   :  { %s880_s12 = smov 0   ;;  %s1048_s0 = inlined_call_operand.vmem [shape: bf16[2,2,5,160], index: 0, kind: input, shape index: {}]   ;;  %s1049_s1 = inlined_call_operand.vmem [shape: bf16[3,160,64], index: 1, kind: input, shape index: {}]   ;;  %s1050_s2 = inlined_call_operand.vmem [shape: f32[5,64], index: 2, kind: input, shape index: {}]   ;;  %s1051_s3 = inlined_call_operand.vmem [shape: f32[2,4,64], index: 3, kind: output, shape index: {}]  }
   0x1 LB: > { %s710_s13 = sadd.s32 4294967295, %s857_s12   ;;  %p714_p0 = scmp.ge.s32.totalorder %s857_s12, 1  ;;  %s857_s12 = sphi %s880_s12, %s13_s12  }
   0x2   : > { %p137_p1 = scmp.lt.s32.totalorder %s857_s12, 3 }
   0x4   : > { %p138_p2 = pnand %p714_p0, %p137_p1 }
   0x5   : > { %v811_v0 = vld [vmem:[%s1049_s1 + $0x50] sm:$0xff] (!%p138_p2)   ;;  %v859_v1 = vmov (!%p138_p2), 0   ;;  %v812_v2 = vld [vmem:[%s1049_s1] sm:$0xff] (!%p138_p2)   ;;  %v813_v3 = vld [vmem:[%s1049_s1 + $0x58] sm:$0xff] (!%p138_p2)   ;;  %p160_p3 = scmp.lt.s32.totalorder (!%p138_p2), %s710_s13, 1  ;;  %vm280_vm0 = vcmask (!%p138_p2), 261120  }
   0x6   : > { %141 = sbr.rel (%p138_p2) target bundleno = 501 (0x1f5), region = 32  ;;  %284 = vmatprep.subr.bf16.mxu0 (!%p138_p2), %v859_v1  ;;  %393 = vmatprep.subr.bf16.mxu1 (!%p138_p2), %v859_v1  ;;  %v814_v4 = vld [vmem:[%s1049_s1 + $0x8] sm:$0xff] (!%p138_p2)   ;;  %v815_v5 = vld [vmem:[%s1049_s1 + $0x60] sm:$0xff] (!%p138_p2)   ;;  %v816_v6 = vld [vmem:[%s1049_s1 + $0x10] sm:$0xff] (!%p138_p2)   ;;  %vm589_vm1 = vcmask (!%p138_p2), 519168   ;;  %vm606_vm2 = vcmask (!%p138_p2), 516096  }
   0x7   : > { %285 = vmatpush1.bf16.msra.mxu0 (!%p138_p2), %v811_v0  ;;  %394 = vmatpush1.bf16.msra.mxu1 (!%p138_p2), %v812_v2  ;;  %v817_v7 = vld [vmem:[%s1049_s1 + $0x68] sm:$0xff] (!%p138_p2)   ;;  %v818_v8 = vld [vmem:[%s1049_s1 + $0x18] sm:$0xff] (!%p138_p2)   ;;  %v819_v9 = vld [vmem:[%s1049_s1 + $0x70] sm:$0xff] (!%p138_p2)  }
   0x8   : > { %286 = vmatprep.subr.bf16.mxu0 (!%p138_p2), %v859_v1  ;;  %395 = vmatprep.subr.bf16.mxu1 (!%p138_p2), %v859_v1  ;;  %v820_v10 = vld [vmem:[%s1049_s1 + $0x20] sm:$0xff] (!%p138_p2)   ;;  %v821_v11 = vld [vmem:[%s1049_s1 + $0x78] sm:$0xff] (!%p138_p2)   ;;  %v822_v12 = vld [vmem:[%s1049_s1 + $0x28] sm:$0xff] (!%p138_p2)  }
   0x9   : > { %v823_v16 = vld [vmem:[%s1049_s1 + $0x80] sm:$0xff] (!%p138_p2)   ;;  %v824_v18 = vld [vmem:[%s1049_s1 + $0x30] sm:$0xff] (!%p138_p2)   ;;  %v825_v20 = vld [vmem:[%s1049_s1 + $0x88] sm:$0xff] (!%p138_p2)  }
   0xa   : > { %v826_v21 = vld [vmem:[%s1049_s1 + $0x38] sm:$0xff] (!%p138_p2)   ;;  %v827_v23 = vld [vmem:[%s1049_s1 + $0x90] sm:$0xff] (!%p138_p2)   ;;  %v828_v24 = vld [vmem:[%s1049_s1 + $0x40] sm:$0xff] (!%p138_p2)  }
   0xb   : > { %287 = vmatpush1.bf16.msra.mxu0 (!%p138_p2), %v813_v3  ;;  %396 = vmatpush1.bf16.msra.mxu1 (!%p138_p2), %v814_v4  ;;  %v829_v26 = vld [vmem:[%s1049_s1 + $0x98] sm:$0xff] (!%p138_p2)   ;;  %v830_v27 = vld [vmem:[%s1049_s1 + $0x48] sm:$0xff] (!%p138_p2)   ;;  %v837_v32 = vld [vmem:[%s1049_s1 + $0xa0] sm:$0xff] (!%p138_p2)  }
   0xc   : > { %288 = vmatprep.subr.bf16.mxu0 (!%p138_p2), %v859_v1  ;;  %397 = vmatprep.subr.bf16.mxu1 (!%p138_p2), %v859_v1  ;;  %v838_v34 = vld [vmem:[%s1049_s1 + $0xa8] sm:$0xff] (!%p138_p2)   ;;  %v839_v35 = vld [vmem:[%s1049_s1 + $0xb0] sm:$0xff] (!%p138_p2)   ;;  %v840_v36 = vld [vmem:[%s1049_s1 + $0xb8] sm:$0xff] (!%p138_p2)  }
   0xd   : > { %s1053_s13 = smov (!%p160_p3, %s710_s13), 1  ;;  %v841_v37 = vld [vmem:[%s1049_s1 + $0xc0] sm:$0xff]   ;;  %v842_v38 = vld [vmem:[%s1049_s1 + $0xc8] sm:$0xff]   ;;  %v843_v39 = vld [vmem:[%s1049_s1 + $0xd0] sm:$0xff]  }
   0xe   : > { %s801_s5 = sshll.u32 %s1053_s13, 4  ;;  %v844_v41 = vld [vmem:[%s1049_s1 + $0xd8] sm:$0xff]   ;;  %v845_v43 = vld [vmem:[%s1049_s1 + $0xe0] sm:$0xff]   ;;  %v846_v46 = vld [vmem:[%s1049_s1 + $0xe8] sm:$0xff]   ;;  %s717_s11 = sshll.u32 %s1053_s13, 2 }
   0xf   : > { %289 = vmatpush1.bf16.msra.mxu0 %v815_v5  ;;  %398 = vmatpush1.bf16.msra.mxu1 %v816_v6  ;;  %s164_s10 = scalar_lea.vmem %s1048_s0, %s801_s5  ;;  %v798_v58 = vld [vmem:[%s1050_s2] ss:$0 sm:$0xff]  ;;  %s168_s16 = scalar_lea.vmem %s1051_s3, %s717_s11 }
  0x10   : > { %290 = vmatprep.subr.bf16.mxu0 %v859_v1  ;;  %399 = vmatprep.subr.bf16.mxu1 %v859_v1  ;;  %v718_v13 = vld [vmem:[%s164_s10 + $0x8] sm:$0x33]  ;;  %v170_v14 = vld [vmem:[%s164_s10] sm:$0x33] }
  0x11   : > { %v740_v15 = vcombine.high %v718_v13, %v718_v13  ;;  %v753_v17 = vcombine.high %v170_v14, %v170_v14  ;;  %v433_v19 = vld [vmem:[%s164_s10] sm:$0x77]  ;;  %v739_v30 = vcombine.low %v718_v13, %v718_v13  ;;  %v752_v31 = vcombine.low %v170_v14, %v170_v14 }
  0x12   : > { %v786_v22 = vcombine.high %v433_v19, %v433_v19  ;;  %v785_v40 = vcombine.low %v433_v19, %v433_v19 }
  0x13   : > { %291 = vmatpush1.bf16.msra.mxu0 %v817_v7  ;;  %400 = vmatpush1.bf16.msra.mxu1 %v818_v8 }
  0x14   : > { %292 = vmatprep.subr.bf16.mxu0 %v859_v1  ;;  %401 = vmatprep.subr.bf16.mxu1 %v859_v1  ;;  %v470_v25 = vshll.u32 %v786_v22, 16  ;;  %v468_v28 = vshrl.u32 %v786_v22, 16  ;;  %v463_v42 = vshll.u32 %v785_v40, 16  ;;  %v461_v44 = vshrl.u32 %v785_v40, 16 }
  0x15   : > { %751 = vmatprep.mubr.msk.bf16.mxu0 %vm280_vm0, %v740_v15  ;;  %764 = vmatprep.mubr.msk.bf16.mxu1 %vm280_vm0, %v753_v17  ;;  %v583_v15 = vld [vmem:[%s1050_s2 + $0x4] sm:$0x1] }
  0x16   : > { %v472_v29 = vrot.slane %v470_v25, 1  ;;  %v465_v45 = vrot.slane %v463_v42, 1 }
  0x17   : > { %293 = vmatpush1.bf16.msra.mxu0 %v819_v9  ;;  %402 = vmatpush1.bf16.msra.mxu1 %v820_v10 }
  0x18   : > { %294 = vmatprep.subr.bf16.mxu0 %v859_v1  ;;  %403 = vmatprep.subr.bf16.mxu1 %v859_v1  ;;  %v473_v33 = vor.u32 %v472_v29, %v468_v28  ;;  %v466_v47 = vor.u32 %v465_v45, %v461_v44 }
  0x1b   : > { %295 = vmatpush1.bf16.msra.mxu0 %v821_v11  ;;  %404 = vmatpush1.bf16.msra.mxu1 %v822_v12  ;;  %v582_v12 = vld [vmem:[%s1050_s2 + $0x3] sm:$0x1] }
  0x1c   : > { %296 = vmatprep.subr.bf16.mxu0 %v859_v1  ;;  %405 = vmatprep.subr.bf16.mxu1 %v859_v1 }
  0x1f   : > { %297 = vmatpush1.bf16.msra.mxu0 %v823_v16  ;;  %406 = vmatpush1.bf16.msra.mxu1 %v824_v18 }
  0x20   : > { %298 = vmatprep.subr.bf16.mxu0 %v859_v1  ;;  %407 = vmatprep.subr.bf16.mxu1 %v859_v1 }
  0x23   : > { %299 = vmatpush1.bf16.msra.mxu0 %v825_v20  ;;  %408 = vmatpush1.bf16.msra.mxu1 %v826_v21 }
  0x24   : > { %300 = vmatprep.subr.bf16.mxu0 %v859_v1  ;;  %409 = vmatprep.subr.bf16.mxu1 %v859_v1 }
  0x27   : > { %301 = vmatpush1.bf16.msra.mxu0 %v827_v23  ;;  %410 = vmatpush1.bf16.msra.mxu1 %v828_v24 }
  0x28   : > { %302 = vmatprep.subr.bf16.mxu0 %v859_v1  ;;  %411 = vmatprep.subr.bf16.mxu1 %v859_v1 }
  0x2b   : > { %303 = vmatpush1.bf16.msra.mxu0 %v829_v26  ;;  %412 = vmatpush1.bf16.msra.mxu1 %v830_v27 }
  0x2c   : > { %538 = vmatprep.subr.bf16.mxu0 %v859_v1 }
  0x2e   : > { %317 = vmatmul.mubr.bf16.vlgmr.msra.gmra.mrb[0].mxu0 %v739_v30  ;;  %426 = vmatmul.mubr.bf16.vlgmr.msra.gmra.mrb[0].mxu1 %v752_v31 }
  0x2f   : > { %539 = vmatpush1.bf16.msra.mxu0 %v837_v32  ;;  %797 = vmatprep.mubr.msk.bf16.mxu0 %vm280_vm0, %v473_v33 }
  0x30   : > { %540 = vmatprep.subr.bf16.mxu0 %v859_v1 }
  0x33   : > { %541 = vmatpush1.bf16.msra.mxu0 %v838_v34 }
  0x34   : > { %542 = vmatprep.subr.bf16.mxu0 %v859_v1 }
  0x37   : > { %543 = vmatpush1.bf16.msra.mxu0 %v839_v35 }
  0x38   : > { %544 = vmatprep.subr.bf16.mxu0 %v859_v1 }
  0x3b   : > { %545 = vmatpush1.bf16.msra.mxu0 %v840_v36 }
  0x3c   : > { %546 = vmatprep.subr.bf16.mxu0 %v859_v1 }
  0x3f   : > { %547 = vmatpush1.bf16.msra.mxu0 %v841_v37 }
  0x40   : > { %548 = vmatprep.subr.bf16.mxu0 %v859_v1 }
  0x43   : > { %549 = vmatpush1.bf16.msra.mxu0 %v842_v38 }
  0x44   : > { %550 = vmatprep.subr.bf16.mxu0 %v859_v1 }
  0x47   : > { %551 = vmatpush1.bf16.msra.mxu0 %v843_v39  ;;  %v643_v39 = vlaneseq }
  0x48   : > { %552 = vmatprep.subr.bf16.mxu0 %v859_v1 }
  0x4b   : > { %553 = vmatpush1.bf16.msra.mxu0 %v844_v41  ;;  %v644_v41 = vshrl.u32 %v643_v39, 7 }
  0x4c   : > { %554 = vmatprep.subr.bf16.mxu0 %v859_v1 }
  0x4f   : > { %555 = vmatpush1.bf16.msra.mxu0 %v845_v43 }
  0x50   : > { %556 = vmatprep.subr.bf16.mxu0 %v859_v1 }
  0x53   : > { %557 = vmatpush1.bf16.msra.mxu0 %v846_v46  ;;  %v580_v46 = vld [vmem:[%s1050_s2 + $0x1] sm:$0x1] }
  0x56   : > { %571 = vmatmul.mubr.bf16.vlgmr.msra.gmra.mrb[4].mxu0 %v466_v47 }
 0x101   : > { %v318_v48 = vpop.f32.mrb[0].mxu0  ;;  %v427_v50 = vpop.f32.mrb[0].mxu1 }
 0x102   : > { %v320_v49 = vpop.f32.mrb[1].mxu0  ;;  %v428_v51 = vadd.f32 %v427_v50, %v318_v48  ;;  %v429_v53 = vpop.f32.mrb[1].mxu1  ;;  %v645_v48 = vsub.s32 0, %v644_v41 }
 0x103   : > { %v321_v52 = vpop.f32.mrb[2].mxu0  ;;  %v430_v55 = vpop.f32.mrb[2].mxu1 }
 0x104   : > { %v322_v54 = vpop.f32.mrb[3].mxu0  ;;  %v431_v56 = vpop.f32.mrb[3].mxu1  ;;  %v581_v52 = vld [vmem:[%s1050_s2 + $0x2] sm:$0x1] }
 0x129   : > { %v572_v57 = vpop.f32.mrb[4].mxu0 }
 0x12a   : > { %v578_v59 = vadd.f32 %v572_v57, %v428_v51  ;;  %v574_v60 = vpop.f32.mrb[5].mxu0 }
 0x12b   : > { %v575_v61 = vpop.f32.mrb[6].mxu0 }
 0x12c   : > { %v1020_v62 = vadd.f32 %v798_v58, %v578_v59  ;;  %v576_v63 = vpop.f32.mrb[7].mxu0 }
 0x12e   : > { %v590_v0 = vsel %vm589_vm1, %v1020_v62, 0.0  ;;  %v597_v1 = vmul.f32 %v1020_v62, %v1020_v62 }
 0x12f   : > { %v591_v2 = vrot.slane %v590_v0, 4 }
 0x130   : > { %v598_v3 = vsel %vm589_vm1, %v597_v1, 0.0 }
 0x131   : > { %v592_v4 = vadd.f32 %v591_v2, %v590_v0  ;;  %v599_v5 = vrot.slane %v598_v3, 4 }
 0x133   : > { %v593_v6 = vrot.slane %v592_v4, 2  ;;  %v600_v7 = vadd.f32 %v599_v5, %v598_v3 }
 0x135   : > { %v594_v8 = vadd.f32 %v593_v6, %v592_v4  ;;  %v601_v9 = vrot.slane %v600_v7, 2 }
 0x137   : > { %v595_v10 = vrot.slane %v594_v8, 1  ;;  %v602_v11 = vadd.f32 %v601_v9, %v600_v7 }
 0x139   : > { %v596_v13 = vadd.f32 %v595_v10, %v594_v8  ;;  %v603_v14 = vrot.slane %v602_v11, 1 }
 0x13b   : > { %v605_v16 = vmul.f32 %v596_v13, %v582_v12  ;;  %v604_v17 = vadd.f32 %v603_v14, %v602_v11  ;;  %v610_v20 = vmul.f32 %v596_v13, %v583_v15 }
 0x13d   : > { %v607_v18 = vsel %vm606_vm2, %v605_v16, 0.0  ;;  %v614_v19 = vmul.f32 %v604_v17, %v582_v12  ;;  %v618_v22 = vmul.f32 %v604_v17, %v583_v15  ;;  %v611_v23 = vsel %vm606_vm2, %v610_v20, 0.0 }
 0x13e   : > { %608 = vadd.xlane.f32.xlu0 %v607_v18 }
 0x13f   : > { %v615_v21 = vsel %vm606_vm2, %v614_v19, 0.0  ;;  %v619_v24 = vsel %vm606_vm2, %v618_v22, 0.0 }
 0x140   : > { %616 = vadd.xlane.f32.xlu1 %v615_v21 }
 0x142   : > { %612 = vadd.xlane.f32.xlu0 %v611_v23 }
 0x144   : > { %620 = vadd.xlane.f32.xlu1 %v619_v24 }
 0x1cb   : > { %v609_v25 = vpop.xlane.xlu0 %608 }
 0x1cc   : > { %v622_v26 = vmul.f32 0.0078125, %v609_v25 }
 0x1cd   : > { %v617_v27 = vpop.xlane.xlu1 %616 }
 0x1ce   : > { %v625_v28 = vmul.f32 %v622_v26, %v622_v26  ;;  %v624_v29 = vmul.f32 0.0078125, %v617_v27  ;;  %v634_v47 = vmul.f32 %v622_v26, %v582_v12 }
 0x1cf   : > { %v613_v30 = vpop.xlane.xlu0 %612 }
 0x1d0   : > { %v626_v31 = vsub.f32 %v624_v29, %v625_v28  ;;  %v623_v32 = vmul.f32 0.0078125, %v613_v30 }
 0x1d1   : > { %v621_v33 = vpop.xlane.xlu1 %620 }
 0x1d2   : > { %v630_v34 = vadd.f32 1e-05, %v626_v31  ;;  %v628_v35 = vmul.f32 %v623_v32, %v623_v32  ;;  %v627_v36 = vmul.f32 0.0078125, %v621_v33  ;;  %v635_v44 = vmul.f32 %v623_v32, %v583_v15 }
 0x1d4   : > { %v629_v37 = vsub.f32 %v627_v36, %v628_v35  ;;  %847 = vrsqrt.f32 %v630_v34  ;;  %v636_v50 = vadd.f32 %v635_v44, %v634_v47 }
 0x1d6   : > { %v632_v38 = vadd.f32 1e-05, %v629_v37 }
 0x1d8   : > { %849 = vrsqrt.f32 %v632_v38 }
 0x1de   : > { %v848_v40 = vpop.eup %847 }
 0x1df   : > { %v637_v43 = vmul.f32 %v848_v40, %v582_v12 }
 0x1e2   : > { %v850_v42 = vpop.eup %849 }
 0x1e3   : > { %v638_v45 = vmul.f32 %v850_v42, %v583_v15 }
 0x1e5   : > { %v639_v49 = vadd.f32 %v638_v45, %v637_v43 }
 0x1e7   : > { %v640_v51 = vmul.f32 %v639_v49, %v580_v46 }
 0x1e9   : > { %v641_v53 = vmul.f32 %v640_v51, %v636_v50  ;;  %v646_v54 = vrot.slane %v640_v51, %v645_v48 }
 0x1eb   : > { %v642_v55 = vsub.f32 %v581_v52, %v641_v53  ;;  %v647_v56 = vmul.f32 %v646_v54, %v1020_v62 }
 0x1ed   : > { %v651_v57 = vrot.slane %v642_v55, %v645_v48 }
 0x1ef   : > { %v652_v58 = vadd.f32 %v651_v57, %v647_v56 }
 0x1f1   : > { %vm653_vm3 = vcmp.gt.f32.partialorder %v652_v58, 0.0  ;;  %v654_v59 = vmul.f32 0.2, %v652_v58 }
 0x1f3   : > { %v655_v60 = vsel %vm653_vm3, %v652_v58, %v654_v59 }
 0x1f4   : > { %656 = vst.msk [vmem:[%s168_s16] sm:$0xf] %vm589_vm1, %v655_v60 }
 0x1f5 PF: > { %s13_s12 = sadd.s32 1, %s857_s12  }
 0x1f6   : > { %p10_p4 = scmp.ge.s32.totalorder %s13_s12, 4  }
 0x1f8   :  { %12 = sbr.rel (!%p10_p4) target bundleno = 1 (0x1), region = 65 }

</bundles_post_ra>
